<compile_context>
chip_gen: v7x
topology: tpu7x:2x2x1
jax: 0.10.0
libtpu: 0.0.40
codegen_flags: <defaults>
</compile_context>

<pallas_src>
import functools
import math

import jax
import jax.numpy as jnp
from jax.experimental import pallas as pl
from jax.experimental.pallas import tpu as pltpu

HIDDEN_SIZE = 32
MULTI_HEAD = 4
D_HEAD = HIDDEN_SIZE // MULTI_HEAD


def _abs_mhatt_kernel(x_ref, w_ref, b_ref, out_ref, *, bblk, lq, lk):
    H = HIDDEN_SIZE
    nh, dh = MULTI_HEAD, D_HEAD
    scale = jnp.float32(1.0 / math.sqrt(dh))

    x = x_ref[...]                        # (bblk*L, 4H) lane-dense activation slab
    k2 = x[:, 0 * H:1 * H]                # (bblk*lk, H)
    q2 = x[:, 1 * H:2 * H]                # (bblk*lq, H)
    ra2 = x[:, 2 * H:3 * H]               # (bblk*lq, H)
    madd = x[:, 3 * H:3 * H + lk]         # (bblk*lq, lk)  additive mask: -1e9 / 0

    w = w_ref[...]                        # (H, 3H) = [Wk^T | Wq^T | Wm^T]
    b = b_ref[...]                        # (1, 3H) = [bk   | bq   | bm  ]
    wk, wq, wm = w[:, 0 * H:1 * H], w[:, 1 * H:2 * H], w[:, 2 * H:3 * H]
    bk, bq, bm = b[:, 0 * H:1 * H], b[:, 1 * H:2 * H], b[:, 2 * H:3 * H]

    # Projections on every (batch, seq) row of the block in one matmul each.
    kp = jnp.dot(k2, wk, preferred_element_type=jnp.float32) + bk
    qp = jax.nn.sigmoid(ra2) * (
        jnp.dot(q2, wq, preferred_element_type=jnp.float32) + bq)
    qp = qp * scale                       # fold 1/sqrt(d_k) into q'

    # Per-batch views: leading-dim splits only -> free layout relabels.
    kp3 = kp.reshape(bblk, lk, H)
    qp3 = qp.reshape(bblk, lq, H)
    madd3 = madd.reshape(bblk, lq, lk)    # already broadcast over q wrapper-side

    # Per-head attention.  Additive -1e9 mask is numerically equivalent to
    # masked_fill here (scores are O(1)); value == key in this module.
    merged = None
    for h in range(nh):
        lo, hi = h * dh, (h + 1) * dh
        qh = qp3[:, :, lo:hi]             # (bblk, lq, dh)
        kh = kp3[:, :, lo:hi]             # (bblk, lk, dh)

        s = jnp.einsum('bqd,bkd->bqk', qh, kh,
                       preferred_element_type=jnp.float32) + madd3
        m = jnp.max(s, axis=-1, keepdims=True)
        e = jnp.exp(s - m)
        att = e * pl.reciprocal(jnp.sum(e, axis=-1, keepdims=True), approx=True)

        av = jnp.einsum('bqk,bkd->bqd', att, kh,
                        preferred_element_type=jnp.float32)     # (bblk, lq, dh)

        # Fused Linear_merge: this head's slice of the merge matmul.  Keep the
        # accumulation adjacent to the dot (v7x MRB in-place accumulate).
        contrib = jnp.dot(av.reshape(bblk * lq, dh), wm[lo:hi, :],
                          preferred_element_type=jnp.float32)   # (bblk*lq, H)
        merged = contrib if merged is None else merged + contrib

    merged = merged + bm                  # (bblk*lq, H)

    # Lane-dense store: repack (bblk*lq, H) -> (bblk*lq/4, 4H) by placing four
    # consecutive row groups side by side in lanes, using 4 tiny MXU matmuls
    # against identity-slice selectors (MXU is otherwise idle here).
    rows = bblk * lq
    qr = rows // 4
    d_io = jax.lax.broadcasted_iota(jnp.int32, (H, 4 * H), 0)   # hoisted iotas
    j_io = jax.lax.broadcasted_iota(jnp.int32, (H, 4 * H), 1)
    out_w = None
    for p in range(4):
        sel = (j_io == d_io + p * H).astype(jnp.float32)        # rows -> lanes [pH, pH+H)
        part = jnp.dot(merged[p * qr:(p + 1) * qr, :], sel,
                       preferred_element_type=jnp.float32)      # (qr, 4H)
        out_w = part if out_w is None else out_w + part
    out_ref[...] = out_w                  # two full 128-lane vreg stores


def abs_mhatt(v, k, q, mask, region_abs, params, *, bblk=None):
    """Pallas implementation of ABS_MHAtt.forward (eval mode).

    v is accepted for signature fidelity but unused (the module sets v = k).
    mask: (B, 1, 1, Lk) boolean, True where attention should be masked out.
    Linear weights are passed pre-transposed as (in, out): kernel computes
    x @ W + b.
    """
    del v  # unused: module aliases value to the projected key
    B, Lq, H = q.shape
    Lk = k.shape[1]
    assert H == HIDDEN_SIZE and 4 * H == 128
    assert Lq == Lk, "packed-slab layout assumes equal q/k lengths"
    assert Lk <= H
    if bblk is None:
        bblk = B                          # single grid step (overhead-bound kernel)
    assert B % bblk == 0
    assert (bblk * Lq) % 32 == 0          # 4 lane groups of >=8 sublanes each

    wk_t, bk, wq_t, bq, wm_t, bm = params

    # ---- wrapper-side layout prep (cheap XLA reshapes/concats, no compute) ----
    # Additive mask pre-broadcast over queries: -1e9 at masked keys, 0 elsewhere.
    madd = jnp.broadcast_to(mask.reshape(B, 1, Lk), (B, Lq, Lk))
    madd = madd.astype(jnp.float32) * jnp.float32(-1e9)

    # One lane-dense (B*L, 128) activation slab: [ k | q | region_abs | mask | pad ].
    pieces = [
        k.reshape(B * Lk, H).astype(jnp.float32),
        q.reshape(B * Lq, H).astype(jnp.float32),
        region_abs.reshape(B * Lq, H).astype(jnp.float32),
        madd.reshape(B * Lq, Lk),
    ]
    pad_w = 4 * H - (3 * H + Lk)
    if pad_w > 0:
        pieces.append(jnp.zeros((B * Lq, pad_w), jnp.float32))
    xslab = jnp.concatenate(pieces, axis=1)                      # (B*L, 128)

    # Packed params: one weight slab, one bias slab.
    wslab = jnp.concatenate([wk_t, wq_t, wm_t], axis=1)          # (H, 3H)
    bslab = jnp.concatenate([bk, bq, bm]).reshape(1, 3 * H)      # (1, 3H)

    n_blk = B // bblk
    qr = (bblk * Lq) // 4

    kernel = functools.partial(_abs_mhatt_kernel, bblk=bblk, lq=Lq, lk=Lk)

    grid_spec = pltpu.PrefetchScalarGridSpec(
        num_scalar_prefetch=0,
        grid=(n_blk,),
        in_specs=[
            pl.BlockSpec((bblk * Lq, 4 * H), lambda b: (b, 0)),  # activation slab
            pl.BlockSpec((H, 3 * H), lambda b: (0, 0)),          # weight slab
            pl.BlockSpec((1, 3 * H), lambda b: (0, 0)),          # bias slab
        ],
        out_specs=pl.BlockSpec((qr, 4 * H), lambda b: (b, 0)),   # lane-dense output
    )

    flops = (
        2 * 2 * (B * Lq) * H * H                                 # k/q projections
        + 2 * 2 * B * MULTI_HEAD * Lq * Lk * D_HEAD              # q@k^T and att@v
        + 2 * (B * Lq) * H * H                                   # fused Linear_merge
        + 4 * 2 * n_blk * qr * H * 4 * H                         # lane-repack matmuls
    )
    transcendentals = B * Lq * H + B * MULTI_HEAD * Lq * Lk + B * MULTI_HEAD * Lq
    bytes_accessed = 4 * (xslab.size + wslab.size + bslab.size + n_blk * qr * 4 * H)

    out128 = pl.pallas_call(
        kernel,
        out_shape=jax.ShapeDtypeStruct((n_blk * qr, 4 * H), jnp.float32),
        grid_spec=grid_spec,
        compiler_params=pltpu.CompilerParams(
            dimension_semantics=("arbitrary",)),
        cost_estimate=pl.CostEstimate(
            flops=flops,
            transcendentals=transcendentals,
            bytes_accessed=bytes_accessed),
    )(xslab, wslab, bslab)

    # Undo the in-kernel lane grouping (layout plumbing only).
    out2d = (out128.reshape(n_blk, qr, 4, H)
             .transpose(0, 2, 1, 3)
             .reshape(B * Lq, H))
    return out2d.reshape(B, Lq, H)


def _reference(v, k, q, mask_bool, region_abs, params):
    """Pure-JAX reference mirroring the PyTorch module (eval mode)."""
    del v
    wk_t, bk, wq_t, bq, wm_t, bm = params
    B, Lq, H = q.shape
    Lk = k.shape[1]

    kp = k @ wk_t + bk
    qp = jax.nn.sigmoid(region_abs) * (q @ wq_t + bq)

    kp = kp.reshape(B, Lk, MULTI_HEAD, D_HEAD).transpose(0, 2, 1, 3)  # (B,Hd,Lk,Dh)
    qp = qp.reshape(B, Lq, MULTI_HEAD, D_HEAD).transpose(0, 2, 1, 3)  # (B,Hd,Lq,Dh)
    vp = kp

    scores = jnp.einsum("bhqd,bhkd->bhqk", qp, kp) / math.sqrt(D_HEAD)
    scores = jnp.where(mask_bool, -1e9, scores)
    att = jax.nn.softmax(scores, axis=-1)
    atted = jnp.einsum("bhqk,bhkd->bhqd", att, vp)
    atted = atted.transpose(0, 2, 1, 3).reshape(B, Lq, H)
    return atted @ wm_t + bm


if __name__ == "__main__":
    B, Lq, Lk, H = 8, 8, 8, HIDDEN_SIZE

    key = jax.random.PRNGKey(0)
    ks = jax.random.split(key, 10)

    # Deterministic params (Linear weight (out,in) -> stored transposed (in,out)).
    init = 1.0 / math.sqrt(H)
    wk_t = jax.random.uniform(ks[0], (H, H), jnp.float32, -init, init)
    bk = jax.random.uniform(ks[1], (H,), jnp.float32, -init, init)
    wq_t = jax.random.uniform(ks[2], (H, H), jnp.float32, -init, init)
    bq = jax.random.uniform(ks[3], (H,), jnp.float32, -init, init)
    wm_t = jax.random.uniform(ks[4], (H, H), jnp.float32, -init, init)
    bm = jax.random.uniform(ks[5], (H,), jnp.float32, -init, init)
    params = (wk_t, bk, wq_t, bq, wm_t, bm)

    # Inputs.
    q = jax.random.normal(ks[6], (B, Lq, H), jnp.float32)
    k = jax.random.normal(ks[7], (B, Lk, H), jnp.float32)
    v = jax.random.normal(ks[8], (B, Lk, H), jnp.float32)  # unused (v = k in module)
    region_abs = jax.random.normal(ks[9], (B, Lq, H), jnp.float32)

    # Boolean mask (B,1,1,Lk): mask out the last two key positions of odd batches.
    mask = jnp.zeros((B, 1, 1, Lk), dtype=bool)
    mask = mask.at[1::2, 0, 0, -2:].set(True)

    out = abs_mhatt(v, k, q, mask, region_abs, params)
    out = jax.block_until_ready(out)

    ref = _reference(v, k, q, mask, region_abs, params)
    assert out.shape == (B, Lq, H)
    # Tolerance relaxed slightly vs. pure-f32 because of the EUP approximate
    # reciprocal used in the softmax normalization.
    assert jnp.allclose(out, ref, atol=2e-3, rtol=2e-3), "mismatch vs pure-JAX reference"

    print("KERNEL_OK")
</pallas_src>

<mosaic_0001>
module attributes {stable_mosaic.version = 11 : i64} {
  func.func @_abs_mhatt_kernel(%arg0: i32, %arg1: memref<64x128xf32, #tpu.memory_space<vmem>>, %arg2: memref<32x96xf32, #tpu.memory_space<vmem>>, %arg3: memref<1x96xf32, #tpu.memory_space<vmem>>, %arg4: memref<16x128xf32, #tpu.memory_space<vmem>>) attributes {dimension_semantics = [#tpu.dimension_semantics<arbitrary>], iteration_bounds = array<i64: 1>, scalar_prefetch = 0 : i64, scratch_operands = 0 : i64, tpu.core_type = #tpu.core_type<tc>, window_params = [{transform_indices = @transform_0, window_bounds = array<i64: 64, 128>}, {pipeline_mode = #tpu.pipeline_mode<synchronous>, transform_indices = @transform_1, window_bounds = array<i64: 32, 96>}, {pipeline_mode = #tpu.pipeline_mode<synchronous>, transform_indices = @transform_2, window_bounds = array<i64: 1, 96>}, {transform_indices = @transform_3, window_bounds = array<i64: 16, 128>}]} {
    %c0 = arith.constant 0 : index
    %c0_0 = arith.constant 0 : index
    %0 = vector.load %arg1[%c0, %c0_0] : memref<64x128xf32, #tpu.memory_space<vmem>>, vector<64x128xf32>
    %1 = vector.extract_strided_slice %0 {offsets = [0, 0], sizes = [64, 32], strides = [1, 1]} : vector<64x128xf32> to vector<64x32xf32>
    %2 = vector.extract_strided_slice %0 {offsets = [0, 32], sizes = [64, 32], strides = [1, 1]} : vector<64x128xf32> to vector<64x32xf32>
    %3 = vector.extract_strided_slice %0 {offsets = [0, 64], sizes = [64, 32], strides = [1, 1]} : vector<64x128xf32> to vector<64x32xf32>
    %4 = vector.extract_strided_slice %0 {offsets = [0, 96], sizes = [64, 8], strides = [1, 1]} : vector<64x128xf32> to vector<64x8xf32>
    %c0_1 = arith.constant 0 : index
    %c0_2 = arith.constant 0 : index
    %5 = vector.load %arg2[%c0_1, %c0_2] : memref<32x96xf32, #tpu.memory_space<vmem>>, vector<32x96xf32>
    %c0_3 = arith.constant 0 : index
    %c0_4 = arith.constant 0 : index
    %6 = vector.load %arg3[%c0_3, %c0_4] : memref<1x96xf32, #tpu.memory_space<vmem>>, vector<1x96xf32>
    %7 = vector.extract_strided_slice %5 {offsets = [0, 0], sizes = [32, 32], strides = [1, 1]} : vector<32x96xf32> to vector<32x32xf32>
    %8 = vector.extract_strided_slice %5 {offsets = [0, 32], sizes = [32, 32], strides = [1, 1]} : vector<32x96xf32> to vector<32x32xf32>
    %9 = vector.extract_strided_slice %5 {offsets = [0, 64], sizes = [32, 32], strides = [1, 1]} : vector<32x96xf32> to vector<32x32xf32>
    %10 = vector.extract_strided_slice %6 {offsets = [0, 0], sizes = [1, 32], strides = [1, 1]} : vector<1x96xf32> to vector<1x32xf32>
    %11 = vector.extract_strided_slice %6 {offsets = [0, 32], sizes = [1, 32], strides = [1, 1]} : vector<1x96xf32> to vector<1x32xf32>
    %12 = vector.extract_strided_slice %6 {offsets = [0, 64], sizes = [1, 32], strides = [1, 1]} : vector<1x96xf32> to vector<1x32xf32>
    %cst = arith.constant dense<0.000000e+00> : vector<64x32xf32>
    %13 = tpu.matmul %1, %7, %cst {dimension_numbers = #tpu.dot_dimension_numbers<[1], [0], [0], [1], [0, 0, 1, 1], [], []>} : vector<64x32xf32>, vector<32x32xf32>, vector<64x32xf32> -> vector<64x32xf32>
    %14 = vector.broadcast %10 : vector<1x32xf32> to vector<64x32xf32>
    %15 = arith.addf %13, %14 : vector<64x32xf32>
    %16 = arith.negf %3 : vector<64x32xf32>
    %17 = math.exp %16 : vector<64x32xf32>
    %cst_5 = arith.constant 1.000000e+00 : f32
    %18 = vector.broadcast %cst_5 : f32 to vector<64x32xf32>
    %19 = arith.addf %18, %17 : vector<64x32xf32>
    %20 = arith.divf %18, %19 : vector<64x32xf32>
    %cst_6 = arith.constant dense<0.000000e+00> : vector<64x32xf32>
    %21 = tpu.matmul %2, %8, %cst_6 {dimension_numbers = #tpu.dot_dimension_numbers<[1], [0], [0], [1], [0, 0, 1, 1], [], []>} : vector<64x32xf32>, vector<32x32xf32>, vector<64x32xf32> -> vector<64x32xf32>
    %22 = vector.broadcast %11 : vector<1x32xf32> to vector<64x32xf32>
    %23 = arith.addf %21, %22 : vector<64x32xf32>
    %24 = arith.mulf %20, %23 : vector<64x32xf32>
    %cst_7 = arith.constant 0.353553385 : f32
    %25 = vector.broadcast %cst_7 : f32 to vector<64x32xf32>
    %26 = arith.mulf %24, %25 : vector<64x32xf32>
    %27 = vector.shape_cast %15 : vector<64x32xf32> to vector<8x8x32xf32>
    %28 = vector.shape_cast %26 : vector<64x32xf32> to vector<8x8x32xf32>
    %29 = vector.shape_cast %4 : vector<64x8xf32> to vector<8x8x8xf32>
    %30 = vector.extract_strided_slice %28 {offsets = [0, 0, 0], sizes = [8, 8, 8], strides = [1, 1, 1]} : vector<8x8x32xf32> to vector<8x8x8xf32>
    %31 = vector.extract_strided_slice %27 {offsets = [0, 0, 0], sizes = [8, 8, 8], strides = [1, 1, 1]} : vector<8x8x32xf32> to vector<8x8x8xf32>
    "tpu.trace_start"() <{level = 10 : i32, message = "bqd,bkd->bqk"}> : () -> ()
    %cst_8 = arith.constant dense<0.000000e+00> : vector<8x8x8xf32>
    %32 = tpu.matmul %30, %31, %cst_8 {dimension_numbers = #tpu.dot_dimension_numbers<[2], [2], [1], [1], [0, 0, 0, 1, 1, 1], [0], [0]>} : vector<8x8x8xf32>, vector<8x8x8xf32>, vector<8x8x8xf32> -> vector<8x8x8xf32>
    "tpu.trace_stop"() : () -> ()
    %33 = arith.addf %32, %29 : vector<8x8x8xf32>
    %cst_9 = arith.constant dense<0xFF800000> : vector<8x8xf32>
    %34 = vector.multi_reduction <maximumf>, %33, %cst_9 [2] : vector<8x8x8xf32> to vector<8x8xf32>
    %35 = vector.shape_cast %34 : vector<8x8xf32> to vector<8x8x1xf32>
    %36 = vector.broadcast %35 : vector<8x8x1xf32> to vector<8x8x8xf32>
    %37 = arith.subf %33, %36 : vector<8x8x8xf32>
    %38 = math.exp %37 : vector<8x8x8xf32>
    %cst_10 = arith.constant dense<0.000000e+00> : vector<8x8xf32>
    %39 = vector.multi_reduction <add>, %38, %cst_10 [2] : vector<8x8x8xf32> to vector<8x8xf32>
    %40 = vector.shape_cast %39 : vector<8x8xf32> to vector<8x8x1xf32>
    %41 = tpu.reciprocal %40 {approx = true} : vector<8x8x1xf32> -> vector<8x8x1xf32>
    %42 = vector.broadcast %41 : vector<8x8x1xf32> to vector<8x8x8xf32>
    %43 = arith.mulf %38, %42 : vector<8x8x8xf32>
    "tpu.trace_start"() <{level = 10 : i32, message = "bqk,bkd->bqd"}> : () -> ()
    %cst_11 = arith.constant dense<0.000000e+00> : vector<8x8x8xf32>
    %44 = tpu.matmul %43, %31, %cst_11 {dimension_numbers = #tpu.dot_dimension_numbers<[2], [1], [1], [2], [0, 0, 0, 1, 1, 2], [0], [0]>} : vector<8x8x8xf32>, vector<8x8x8xf32>, vector<8x8x8xf32> -> vector<8x8x8xf32>
    "tpu.trace_stop"() : () -> ()
    %45 = vector.shape_cast %44 : vector<8x8x8xf32> to vector<64x8xf32>
    %46 = vector.extract_strided_slice %9 {offsets = [0, 0], sizes = [8, 32], strides = [1, 1]} : vector<32x32xf32> to vector<8x32xf32>
    %cst_12 = arith.constant dense<0.000000e+00> : vector<64x32xf32>
    %47 = tpu.matmul %45, %46, %cst_12 {dimension_numbers = #tpu.dot_dimension_numbers<[1], [0], [0], [1], [0, 0, 1, 1], [], []>} : vector<64x8xf32>, vector<8x32xf32>, vector<64x32xf32> -> vector<64x32xf32>
    %48 = vector.extract_strided_slice %28 {offsets = [0, 0, 8], sizes = [8, 8, 8], strides = [1, 1, 1]} : vector<8x8x32xf32> to vector<8x8x8xf32>
    %49 = vector.extract_strided_slice %27 {offsets = [0, 0, 8], sizes = [8, 8, 8], strides = [1, 1, 1]} : vector<8x8x32xf32> to vector<8x8x8xf32>
    "tpu.trace_start"() <{level = 10 : i32, message = "bqd,bkd->bqk"}> : () -> ()
    %cst_13 = arith.constant dense<0.000000e+00> : vector<8x8x8xf32>
    %50 = tpu.matmul %48, %49, %cst_13 {dimension_numbers = #tpu.dot_dimension_numbers<[2], [2], [1], [1], [0, 0, 0, 1, 1, 1], [0], [0]>} : vector<8x8x8xf32>, vector<8x8x8xf32>, vector<8x8x8xf32> -> vector<8x8x8xf32>
    "tpu.trace_stop"() : () -> ()
    %51 = arith.addf %50, %29 : vector<8x8x8xf32>
    %cst_14 = arith.constant dense<0xFF800000> : vector<8x8xf32>
    %52 = vector.multi_reduction <maximumf>, %51, %cst_14 [2] : vector<8x8x8xf32> to vector<8x8xf32>
    %53 = vector.shape_cast %52 : vector<8x8xf32> to vector<8x8x1xf32>
    %54 = vector.broadcast %53 : vector<8x8x1xf32> to vector<8x8x8xf32>
    %55 = arith.subf %51, %54 : vector<8x8x8xf32>
    %56 = math.exp %55 : vector<8x8x8xf32>
    %cst_15 = arith.constant dense<0.000000e+00> : vector<8x8xf32>
    %57 = vector.multi_reduction <add>, %56, %cst_15 [2] : vector<8x8x8xf32> to vector<8x8xf32>
    %58 = vector.shape_cast %57 : vector<8x8xf32> to vector<8x8x1xf32>
    %59 = tpu.reciprocal %58 {approx = true} : vector<8x8x1xf32> -> vector<8x8x1xf32>
    %60 = vector.broadcast %59 : vector<8x8x1xf32> to vector<8x8x8xf32>
    %61 = arith.mulf %56, %60 : vector<8x8x8xf32>
    "tpu.trace_start"() <{level = 10 : i32, message = "bqk,bkd->bqd"}> : () -> ()
    %cst_16 = arith.constant dense<0.000000e+00> : vector<8x8x8xf32>
    %62 = tpu.matmul %61, %49, %cst_16 {dimension_numbers = #tpu.dot_dimension_numbers<[2], [1], [1], [2], [0, 0, 0, 1, 1, 2], [0], [0]>} : vector<8x8x8xf32>, vector<8x8x8xf32>, vector<8x8x8xf32> -> vector<8x8x8xf32>
    "tpu.trace_stop"() : () -> ()
    %63 = vector.shape_cast %62 : vector<8x8x8xf32> to vector<64x8xf32>
    %64 = vector.extract_strided_slice %9 {offsets = [8, 0], sizes = [8, 32], strides = [1, 1]} : vector<32x32xf32> to vector<8x32xf32>
    %cst_17 = arith.constant dense<0.000000e+00> : vector<64x32xf32>
    %65 = tpu.matmul %63, %64, %cst_17 {dimension_numbers = #tpu.dot_dimension_numbers<[1], [0], [0], [1], [0, 0, 1, 1], [], []>} : vector<64x8xf32>, vector<8x32xf32>, vector<64x32xf32> -> vector<64x32xf32>
    %66 = arith.addf %47, %65 : vector<64x32xf32>
    %67 = vector.extract_strided_slice %28 {offsets = [0, 0, 16], sizes = [8, 8, 8], strides = [1, 1, 1]} : vector<8x8x32xf32> to vector<8x8x8xf32>
    %68 = vector.extract_strided_slice %27 {offsets = [0, 0, 16], sizes = [8, 8, 8], strides = [1, 1, 1]} : vector<8x8x32xf32> to vector<8x8x8xf32>
    "tpu.trace_start"() <{level = 10 : i32, message = "bqd,bkd->bqk"}> : () -> ()
    %cst_18 = arith.constant dense<0.000000e+00> : vector<8x8x8xf32>
    %69 = tpu.matmul %67, %68, %cst_18 {dimension_numbers = #tpu.dot_dimension_numbers<[2], [2], [1], [1], [0, 0, 0, 1, 1, 1], [0], [0]>} : vector<8x8x8xf32>, vector<8x8x8xf32>, vector<8x8x8xf32> -> vector<8x8x8xf32>
    "tpu.trace_stop"() : () -> ()
    %70 = arith.addf %69, %29 : vector<8x8x8xf32>
    %cst_19 = arith.constant dense<0xFF800000> : vector<8x8xf32>
    %71 = vector.multi_reduction <maximumf>, %70, %cst_19 [2] : vector<8x8x8xf32> to vector<8x8xf32>
    %72 = vector.shape_cast %71 : vector<8x8xf32> to vector<8x8x1xf32>
    %73 = vector.broadcast %72 : vector<8x8x1xf32> to vector<8x8x8xf32>
    %74 = arith.subf %70, %73 : vector<8x8x8xf32>
    %75 = math.exp %74 : vector<8x8x8xf32>
    %cst_20 = arith.constant dense<0.000000e+00> : vector<8x8xf32>
    %76 = vector.multi_reduction <add>, %75, %cst_20 [2] : vector<8x8x8xf32> to vector<8x8xf32>
    %77 = vector.shape_cast %76 : vector<8x8xf32> to vector<8x8x1xf32>
    %78 = tpu.reciprocal %77 {approx = true} : vector<8x8x1xf32> -> vector<8x8x1xf32>
    %79 = vector.broadcast %78 : vector<8x8x1xf32> to vector<8x8x8xf32>
    %80 = arith.mulf %75, %79 : vector<8x8x8xf32>
    "tpu.trace_start"() <{level = 10 : i32, message = "bqk,bkd->bqd"}> : () -> ()
    %cst_21 = arith.constant dense<0.000000e+00> : vector<8x8x8xf32>
    %81 = tpu.matmul %80, %68, %cst_21 {dimension_numbers = #tpu.dot_dimension_numbers<[2], [1], [1], [2], [0, 0, 0, 1, 1, 2], [0], [0]>} : vector<8x8x8xf32>, vector<8x8x8xf32>, vector<8x8x8xf32> -> vector<8x8x8xf32>
    "tpu.trace_stop"() : () -> ()
    %82 = vector.shape_cast %81 : vector<8x8x8xf32> to vector<64x8xf32>
    %83 = vector.extract_strided_slice %9 {offsets = [16, 0], sizes = [8, 32], strides = [1, 1]} : vector<32x32xf32> to vector<8x32xf32>
    %cst_22 = arith.constant dense<0.000000e+00> : vector<64x32xf32>
    %84 = tpu.matmul %82, %83, %cst_22 {dimension_numbers = #tpu.dot_dimension_numbers<[1], [0], [0], [1], [0, 0, 1, 1], [], []>} : vector<64x8xf32>, vector<8x32xf32>, vector<64x32xf32> -> vector<64x32xf32>
    %85 = arith.addf %66, %84 : vector<64x32xf32>
    %86 = vector.extract_strided_slice %28 {offsets = [0, 0, 24], sizes = [8, 8, 8], strides = [1, 1, 1]} : vector<8x8x32xf32> to vector<8x8x8xf32>
    %87 = vector.extract_strided_slice %27 {offsets = [0, 0, 24], sizes = [8, 8, 8], strides = [1, 1, 1]} : vector<8x8x32xf32> to vector<8x8x8xf32>
    "tpu.trace_start"() <{level = 10 : i32, message = "bqd,bkd->bqk"}> : () -> ()
    %cst_23 = arith.constant dense<0.000000e+00> : vector<8x8x8xf32>
    %88 = tpu.matmul %86, %87, %cst_23 {dimension_numbers = #tpu.dot_dimension_numbers<[2], [2], [1], [1], [0, 0, 0, 1, 1, 1], [0], [0]>} : vector<8x8x8xf32>, vector<8x8x8xf32>, vector<8x8x8xf32> -> vector<8x8x8xf32>
    "tpu.trace_stop"() : () -> ()
    %89 = arith.addf %88, %29 : vector<8x8x8xf32>
    %cst_24 = arith.constant dense<0xFF800000> : vector<8x8xf32>
    %90 = vector.multi_reduction <maximumf>, %89, %cst_24 [2] : vector<8x8x8xf32> to vector<8x8xf32>
    %91 = vector.shape_cast %90 : vector<8x8xf32> to vector<8x8x1xf32>
    %92 = vector.broadcast %91 : vector<8x8x1xf32> to vector<8x8x8xf32>
    %93 = arith.subf %89, %92 : vector<8x8x8xf32>
    %94 = math.exp %93 : vector<8x8x8xf32>
    %cst_25 = arith.constant dense<0.000000e+00> : vector<8x8xf32>
    %95 = vector.multi_reduction <add>, %94, %cst_25 [2] : vector<8x8x8xf32> to vector<8x8xf32>
    %96 = vector.shape_cast %95 : vector<8x8xf32> to vector<8x8x1xf32>
    %97 = tpu.reciprocal %96 {approx = true} : vector<8x8x1xf32> -> vector<8x8x1xf32>
    %98 = vector.broadcast %97 : vector<8x8x1xf32> to vector<8x8x8xf32>
    %99 = arith.mulf %94, %98 : vector<8x8x8xf32>
    "tpu.trace_start"() <{level = 10 : i32, message = "bqk,bkd->bqd"}> : () -> ()
    %cst_26 = arith.constant dense<0.000000e+00> : vector<8x8x8xf32>
    %100 = tpu.matmul %99, %87, %cst_26 {dimension_numbers = #tpu.dot_dimension_numbers<[2], [1], [1], [2], [0, 0, 0, 1, 1, 2], [0], [0]>} : vector<8x8x8xf32>, vector<8x8x8xf32>, vector<8x8x8xf32> -> vector<8x8x8xf32>
    "tpu.trace_stop"() : () -> ()
    %101 = vector.shape_cast %100 : vector<8x8x8xf32> to vector<64x8xf32>
    %102 = vector.extract_strided_slice %9 {offsets = [24, 0], sizes = [8, 32], strides = [1, 1]} : vector<32x32xf32> to vector<8x32xf32>
    %cst_27 = arith.constant dense<0.000000e+00> : vector<64x32xf32>
    %103 = tpu.matmul %101, %102, %cst_27 {dimension_numbers = #tpu.dot_dimension_numbers<[1], [0], [0], [1], [0, 0, 1, 1], [], []>} : vector<64x8xf32>, vector<8x32xf32>, vector<64x32xf32> -> vector<64x32xf32>
    %104 = arith.addf %85, %103 : vector<64x32xf32>
    %105 = vector.broadcast %12 : vector<1x32xf32> to vector<64x32xf32>
    %106 = arith.addf %104, %105 : vector<64x32xf32>
    %107 = tpu.iota {dimensions = array<i32: 0>} : vector<32x128xi32>
    %108 = tpu.iota {dimensions = array<i32: 1>} : vector<32x128xi32>
    %c0_i32 = arith.constant 0 : i32
    %109 = vector.broadcast %c0_i32 : i32 to vector<32x128xi32>
    %110 = arith.addi %107, %109 : vector<32x128xi32>
    %111 = arith.cmpi eq, %108, %110 : vector<32x128xi32>
    %112 = arith.extui %111 : vector<32x128xi1> to vector<32x128xi32>
    %113 = arith.sitofp %112 : vector<32x128xi32> to vector<32x128xf32>
    %114 = vector.extract_strided_slice %106 {offsets = [0, 0], sizes = [16, 32], strides = [1, 1]} : vector<64x32xf32> to vector<16x32xf32>
    %cst_28 = arith.constant dense<0.000000e+00> : vector<16x128xf32>
    %115 = tpu.matmul %114, %113, %cst_28 {dimension_numbers = #tpu.dot_dimension_numbers<[1], [0], [0], [1], [0, 0, 1, 1], [], []>} : vector<16x32xf32>, vector<32x128xf32>, vector<16x128xf32> -> vector<16x128xf32>
    %c32_i32 = arith.constant 32 : i32
    %116 = vector.broadcast %c32_i32 : i32 to vector<32x128xi32>
    %117 = arith.addi %107, %116 : vector<32x128xi32>
    %118 = arith.cmpi eq, %108, %117 : vector<32x128xi32>
    %119 = arith.extui %118 : vector<32x128xi1> to vector<32x128xi32>
    %120 = arith.sitofp %119 : vector<32x128xi32> to vector<32x128xf32>
    %121 = vector.extract_strided_slice %106 {offsets = [16, 0], sizes = [16, 32], strides = [1, 1]} : vector<64x32xf32> to vector<16x32xf32>
    %cst_29 = arith.constant dense<0.000000e+00> : vector<16x128xf32>
    %122 = tpu.matmul %121, %120, %cst_29 {dimension_numbers = #tpu.dot_dimension_numbers<[1], [0], [0], [1], [0, 0, 1, 1], [], []>} : vector<16x32xf32>, vector<32x128xf32>, vector<16x128xf32> -> vector<16x128xf32>
    %123 = arith.addf %115, %122 : vector<16x128xf32>
    %c64_i32 = arith.constant 64 : i32
    %124 = vector.broadcast %c64_i32 : i32 to vector<32x128xi32>
    %125 = arith.addi %107, %124 : vector<32x128xi32>
    %126 = arith.cmpi eq, %108, %125 : vector<32x128xi32>
    %127 = arith.extui %126 : vector<32x128xi1> to vector<32x128xi32>
    %128 = arith.sitofp %127 : vector<32x128xi32> to vector<32x128xf32>
    %129 = vector.extract_strided_slice %106 {offsets = [32, 0], sizes = [16, 32], strides = [1, 1]} : vector<64x32xf32> to vector<16x32xf32>
    %cst_30 = arith.constant dense<0.000000e+00> : vector<16x128xf32>
    %130 = tpu.matmul %129, %128, %cst_30 {dimension_numbers = #tpu.dot_dimension_numbers<[1], [0], [0], [1], [0, 0, 1, 1], [], []>} : vector<16x32xf32>, vector<32x128xf32>, vector<16x128xf32> -> vector<16x128xf32>
    %131 = arith.addf %123, %130 : vector<16x128xf32>
    %c96_i32 = arith.constant 96 : i32
    %132 = vector.broadcast %c96_i32 : i32 to vector<32x128xi32>
    %133 = arith.addi %107, %132 : vector<32x128xi32>
    %134 = arith.cmpi eq, %108, %133 : vector<32x128xi32>
    %135 = arith.extui %134 : vector<32x128xi1> to vector<32x128xi32>
    %136 = arith.sitofp %135 : vector<32x128xi32> to vector<32x128xf32>
    %137 = vector.extract_strided_slice %106 {offsets = [48, 0], sizes = [16, 32], strides = [1, 1]} : vector<64x32xf32> to vector<16x32xf32>
    %cst_31 = arith.constant dense<0.000000e+00> : vector<16x128xf32>
    %138 = tpu.matmul %137, %136, %cst_31 {dimension_numbers = #tpu.dot_dimension_numbers<[1], [0], [0], [1], [0, 0, 1, 1], [], []>} : vector<16x32xf32>, vector<32x128xf32>, vector<16x128xf32> -> vector<16x128xf32>
    %139 = arith.addf %131, %138 : vector<16x128xf32>
    %c0_32 = arith.constant 0 : index
    %c0_33 = arith.constant 0 : index
    %140 = vector.load %arg4[%c0_32, %c0_33] : memref<16x128xf32, #tpu.memory_space<vmem>>, vector<16x128xf32>
    tpu.vector_store %arg4[%c0_32, %c0_33], %139 {strides = array<i32>} : memref<16x128xf32, #tpu.memory_space<vmem>>, vector<16x128xf32>,
    return
  }
  func.func @transform_0(%arg0: i32) -> (i32, i32) {
    %c0_i32 = arith.constant 0 : i32
    %c0_i32_0 = arith.constant 0 : i32
    return %arg0, %c0_i32 : i32, i32
  }
  func.func @transform_1(%arg0: i32) -> (i32, i32) {
    %c0_i32 = arith.constant 0 : i32
    %c0_i32_0 = arith.constant 0 : i32
    %c0_i32_1 = arith.constant 0 : i32
    return %c0_i32, %c0_i32_0 : i32, i32
  }
  func.func @transform_2(%arg0: i32) -> (i32, i32) {
    %c0_i32 = arith.constant 0 : i32
    %c0_i32_0 = arith.constant 0 : i32
    %c0_i32_1 = arith.constant 0 : i32
    return %c0_i32, %c0_i32_0 : i32, i32
  }
  func.func @transform_3(%arg0: i32) -> (i32, i32) {
    %c0_i32 = arith.constant 0 : i32
    %c0_i32_0 = arith.constant 0 : i32
    return %arg0, %c0_i32 : i32, i32
  }
}

</mosaic_0001>

<bundles_post_ra>
// kernel: tpu_custom_call.1
= control target key start
LH: loop header
LB: loop body
LE: loop exit
PB: predicated region body
PF: predicated region fallthrough
CT: control target
= control target key end

     0   :  { %8 = vsyncpa [#allocation3], 0  ;;  %s9004_s0 = inlined_call_operand.hbm [shape: f32[64,128], index: 0, kind: input, shape index: {}]   ;;  %s9005_s1 = inlined_call_operand.hbm [shape: f32[32,96], index: 1, kind: input, shape index: {}]   ;;  %s9006_s2 = inlined_call_operand.vmem [shape: f32[1,96], index: 2, kind: input, shape index: {}]   ;;  %s9007_s3 = inlined_call_operand.hbm [shape: f32[16,128], index: 3, kind: output, shape index: {}]  }
   0x1   :  { %9 = vsyncpa [#allocation6], 0 }
   0x2   :  { %10 = vsyncpa [#allocation4], 0  ;;  %s7858_s12 = smov [#allocation2]   ;;  %s7786_s16 = scalar_lea.hbm %s9004_s0, 1024 }
   0x3   :  { %s16_s13 = sshll.u32 %s7858_s12, 4  ;;  %p7787_p0 = scmp.ne.s32.totalorder %s9004_s0, %s7786_s16  ;;  %s17_s13 = int_to_ptr.vmem [resolvable:$true] %s16_s13 }
   0x4   :  { %p7790_p1 = scmp.lt.u32.totalorder %s7786_s16, %s9004_s0 }
   0x6   :  { %p7792_p2 = pnand %p7790_p1, %p7787_p0 }
   0x8   :  { %7795 = shalt.err (!%p7792_p2)
}
   0x9   :  { %s7796_s21 = scalar_lea.vmem %s17_s13, 1024  ;;  %p7801_p4 = scmp.lt.s32.totalorder %s17_s13, %s17_s13 }
   0xa   :  { %p7797_p3 = scmp.ne.s32.totalorder %s17_s13, %s7796_s21  ;;  %p7802_p5 = scmp.lt.s32.totalorder %s7796_s21, %s7796_s21 }
   0xc   :  { %p7803_p6 = por %p7802_p5, %p7801_p4 }
   0xe   :  { %p7804_p7 = pnand %p7803_p6, %p7797_p3 }
  0x10   :  { %7807 = shalt.err (!%p7804_p7)
}
  0x11   :  { %s7859_s22 = smov 128   ;;  %s7860_s23 = smov 8  }
  0x12   :  { %22 = dma.hbm_to_vmem [thread:$0]  %s9004_s0, 1024, %s17_s13, [#allocation3], %s7859_s22, %s7859_s22, %s7860_s23  }
  0x13   :  { %s7861_s26 = smov [#allocation5]   ;;  %s7808_s30 = scalar_lea.hbm %s9005_s1, 512 }
  0x14   :  { %s28_s27 = sshll.u32 %s7861_s26, 4  ;;  %p7809_p8 = scmp.ne.s32.totalorder %s9005_s1, %s7808_s30  ;;  %s29_s27 = int_to_ptr.vmem [resolvable:$true] %s28_s27 }
  0x15   :  { %p7812_p9 = scmp.lt.u32.totalorder %s7808_s30, %s9005_s1 }
  0x17   :  { %p7814_p10 = pnand %p7812_p9, %p7809_p8 }
  0x19   :  { %7817 = shalt.err (!%p7814_p10)
}
  0x1a   :  { %s7818_s8 = scalar_lea.vmem %s29_s27, 512  ;;  %p7823_p12 = scmp.lt.s32.totalorder %s29_s27, %s29_s27 }
  0x1b   :  { %p7819_p11 = scmp.ne.s32.totalorder %s29_s27, %s7818_s8  ;;  %p7824_p13 = scmp.lt.s32.totalorder %s7818_s8, %s7818_s8 }
  0x1d   :  { %p7825_p0 = por %p7824_p13, %p7823_p12 }
  0x1f   :  { %p7826_p1 = pnand %p7825_p0, %p7819_p11 }
  0x21   :  { %7829 = shalt.err (!%p7826_p1)
}
  0x22   :  { %34 = dma.hbm_to_vmem [thread:$0]  %s9005_s1, 512, %s29_s27, [#allocation6], %s7859_s22, %s7859_s22, %s7860_s23  }
  0x23   :  { %7852 = dma.done.wait [#allocation3], 1024  }
  0x24   :  { %7853 = vsyncadd [#allocation3], 4294966272 }
  0x25   :  { %7854 = dma.done.wait [#allocation6], 512  }
  0x26   :  { %7855 = vsyncadd [#allocation6], 4294966784  ;;  %vm62_vm0 = vcmask 261120   ;;  %v51_v0 = vld [vmem:[#allocation5] sm:$0xff]  ;;  %v52_v1 = vld [vmem:[#allocation5 + $0x8] sm:$0xff]  ;;  %s7862_s10 = smov 96  }
  0x27   :  { %v53_v2 = vld [vmem:[#allocation5 + $0x10] sm:$0xff]  ;;  %v7611_v3 = vpack.i.bf16 %v52_v1, %v51_v0  ;;  %v54_v4 = vld [vmem:[#allocation5 + $0x18] sm:$0xff]  ;;  %v7925_v5 = vld [vmem:[#allocation2] sm:$0xff]  ;;  %v7512_v6 = vpack.c.bf16 %v52_v1, %v51_v0  ;;  %v9008_v30 = vmov 0.0   ;;  %vm450_vm1 = vcmask 64512   ;;  %s7864_s12 = smov 64  }
  0x28   :  { %240 = vrot.lane.b32.xlu1 %v7925_v5, %s7862_s10  ;;  %v7516_v7 = vpack.c.bf16 %v54_v4, %v53_v2  ;;  %7060 = vmatprep.mubr.msk.f32.mxu0 %vm62_vm0, %v7925_v5  ;;  %v7616_v8 = vpack.i.bf16 %v54_v4, %v53_v2  ;;  %v7932_v9 = vld [vmem:[#allocation2 + $0x8] sm:$0xff]  ;;  %v7937_v10 = vld [vmem:[#allocation2 + $0x18] sm:$0xff]  ;;  %v7939_v11 = vld [vmem:[#allocation2 + $0x10] sm:$0xff]  ;;  %vm7865_vm2 = vmmov 0   ;;  %s7866_s13 = smov 32   ;;  %s7867_s14 = smov 120  }
  0x29   :  { %7612 = vrot.lane.b32.xlu0 %v7611_v3, %s7862_s10  ;;  %7513 = vmatprep.subr.bf16.mxu0 %v7512_v6  ;;  %v7945_v12 = vld [vmem:[#allocation2 + $0x28] sm:$0xff]  ;;  %v7949_v13 = vld [vmem:[#allocation2 + $0x20] sm:$0xff]  ;;  %v7957_v14 = vld [vmem:[#allocation2 + $0x38] sm:$0xff]  ;;  %v6657_v57 = vmul.f32 -1.442695, %v7932_v9  ;;  %s7868_s15 = smov 56  }
  0x2a   :  { %7515 = vmatpush3.bf16.msra.mxu0 %v7512_v6  ;;  %v7961_v15 = vld [vmem:[#allocation2 + $0x30] sm:$0xff]  ;;  %v7976_v16 = vld [vmem:[%s9006_s2] ss:$0 sm:$0xff]  ;;  %v6659_v58 = vmul.f32 -1.442695, %v7937_v10  ;;  %s7869_s16 = smov 48  }
  0x2b   :  { %7517 = vmatprep.subr.bf16.mxu0 %v7516_v7  ;;  %7621 = vpow2.f32 %v6657_v57  ;;  %v6661_v59 = vmul.f32 -1.442695, %v7945_v12  ;;  %v6663_v60 = vmul.f32 -1.442695, %v7957_v14  ;;  %s7870_s17 = smov 112   ;;  %s7871_s18 = smov 40  }
  0x2c   :  { %242 = vrot.lane.b32.xlu1 %v7932_v9, %s7862_s10  ;;  %7623 = vpow2.f32 %v6659_v58  ;;  %s7872_s19 = smov 104  }
  0x2d   :  { %7617 = vrot.lane.b32.xlu0 %v7616_v8, %s7862_s10  ;;  %7625 = vpow2.f32 %v6661_v59 }
  0x2e   :  { %7519 = vmatpush3.bf16.msra.mxu0 %v7516_v7  ;;  %7627 = vpow2.f32 %v6663_v60 }
  0x30   :  { %246 = vrot.lane.b32.xlu1 %v7937_v10, %s7862_s10 }
  0x31   :  { %244 = vrot.lane.b32.xlu0 %v7939_v11, %s7862_s10  ;;  %7061 = vmatmul.mubr.msk.f32.vlgmr.msra.gmra.mrb[0].mxu0 %vm62_vm0, %v7932_v9 }
  0x32   :  { %7063 = vmatprep.mubr.msk.f32.mxu0 %vm62_vm0, %v7939_v11 }
  0x34   :  { %250 = vrot.lane.b32.xlu1 %v7945_v12, %s7862_s10 }
  0x35   :  { %248 = vrot.lane.b32.xlu0 %v7949_v13, %s7862_s10  ;;  %7064 = vmatmul.mubr.msk.f32.gmra.mrb[2].mxu0 %vm62_vm0, %v7937_v10  ;;  %v7622_v61 = vpop.eup %7621 }
  0x36   :  { %7066 = vmatprep.mubr.msk.f32.mxu0 %vm62_vm0, %v7949_v13  ;;  %v7624_v62 = vpop.eup %7623  ;;  %v217_v63 = vadd.f32 1.0, %v7622_v61 }
  0x37   :  { %v7626_v0 = vpop.eup %7625  ;;  %v219_v1 = vadd.f32 1.0, %v7624_v62 }
  0x38   :  { %254 = vrot.lane.b32.xlu1 %v7957_v14, %s7862_s10  ;;  %7629 = vrcp.f32 %v217_v63  ;;  %v221_v2 = vadd.f32 1.0, %v7626_v0  ;;  %v7628_v3 = vpop.eup %7627 }
  0x39   :  { %252 = vrot.lane.b32.xlu0 %v7961_v15, %s7862_s10  ;;  %7067 = vmatmul.mubr.msk.f32.gmra.mrb[4].mxu0 %vm62_vm0, %v7945_v12  ;;  %7631 = vrcp.f32 %v219_v1  ;;  %v223_v4 = vadd.f32 1.0, %v7628_v3 }
  0x3a   :  { %7069 = vmatprep.mubr.msk.f32.mxu0 %vm62_vm0, %v7961_v15  ;;  %7633 = vrcp.f32 %v221_v2 }
  0x3b   :  { %7635 = vrcp.f32 %v223_v4 }
  0x3d   :  { %7070 = vmatmul.mubr.msk.f32.gmra.mrb[6].mxu0 %vm62_vm0, %v7957_v14  ;;  %272 = vrot.lane.b32.xlu0 %v7976_v16, %s7862_s10 }
  0x42   :  { %v7630_v6 = vpop.eup %7629 }
  0x43   :  { %v7632_v8 = vpop.eup %7631 }
  0x9a   :  { %v241_v17 = vpop.permute.xlu1 %240 }
  0x9b   :  { %v7613_v18 = vpop.permute.xlu0 %7612  ;;  %7080 = vmatprep.mubr.msk.f32.mxu0 %vm62_vm0, %v241_v17 }
  0x9c   :  { %v7615_v19 = vunpack.i.h.bf16 %v7613_v18  ;;  %v7614_v20 = vunpack.i.l.bf16 %v7613_v18  ;;  %v7634_v18 = vpop.eup %7633 }
  0x9e   :  { %v7520_v21 = vpack.c.bf16 %v7615_v19, %v7614_v20  ;;  %v243_v22 = vpop.permute.xlu1 %242 }
  0x9f   :  { %v7618_v23 = vpop.permute.xlu0 %7617 }
  0xa0   :  { %v7620_v24 = vunpack.i.h.bf16 %v7618_v23  ;;  %v7619_v25 = vunpack.i.l.bf16 %v7618_v23  ;;  %7521 = vmatprep.subr.bf16.mxu0 %v7520_v21  ;;  %7560 = vmatprep.subr.bf16.mxu1 %v7520_v21 }
  0xa1   :  { %7523 = vmatpush3.bf16.msra.mxu0 %v7520_v21  ;;  %7562 = vmatpush3.bf16.msra.mxu1 %v7520_v21 }
  0xa2   :  { %v7524_v26 = vpack.c.bf16 %v7620_v24, %v7619_v25  ;;  %v247_v27 = vpop.permute.xlu1 %246  ;;  %v7636_v24 = vpop.eup %7635 }
  0xa3   :  { %v245_v28 = vpop.permute.xlu0 %244 }
  0xa4   :  { %7525 = vmatprep.subr.bf16.mxu0 %v7524_v26  ;;  %7561 = vmatprep.subr.bf16.mxu1 %v7524_v26 }
  0xa5   :  { %7527 = vmatpush3.bf16.msra.mxu0 %v7524_v26  ;;  %7563 = vmatpush3.bf16.msra.mxu1 %v7524_v26 }
  0xa6   :  { %v251_v29 = vpop.permute.xlu1 %250  ;;  %7092 = vmatprep.subr.mxu0 %v9008_v30  ;;  %7097 = vmatprep.subr.mxu1 %v9008_v30 }
  0xa7   :  { %v249_v31 = vpop.permute.xlu0 %248 }
  0xa8   :  { %7081 = vmatmul.mubr.msk.f32.vlgmr.msra.gmra.mrb[8].mxu0 %vm62_vm0, %v243_v22  ;;  %7086 = vmatprep.mubr.msk.f32.mxu1 %vm62_vm0, %v249_v31 }
  0xa9   :  { %7083 = vmatprep.mubr.msk.f32.mxu0 %vm62_vm0, %v245_v28  ;;  %7087 = vmatmul.mubr.msk.f32.vlgmr.msra.gmra.mrb[0].mxu1 %vm62_vm0, %v251_v29 }
  0xaa   :  { %v255_v32 = vpop.permute.xlu1 %254 }
  0xab   :  { %v253_v33 = vpop.permute.xlu0 %252 }
  0xac   :  { %7084 = vmatmul.mubr.msk.f32.gmra.mrb[10].mxu0 %vm62_vm0, %v247_v27  ;;  %7089 = vmatprep.mubr.msk.f32.mxu1 %vm62_vm0, %v253_v33 }
  0xad   :  { %7090 = vmatmul.mubr.msk.f32.gmra.mrb[2].mxu1 %vm62_vm0, %v255_v32  ;;  %7094 = vmatprep.mubr.msk.f32.mxu0 %vm7865_vm2, %v9008_v30 }
  0xae   :  { %7099 = vmatprep.mubr.msk.f32.mxu1 %vm7865_vm2, %v9008_v30 }
  0xaf   :  { %v8016_v44 = vpop.permute.xlu0 %272 }
 0x104   :  { %v7062_v34 = vpop.f32.mrb[0].mxu0 }
 0x105   :  { %v7993_v35 = vadd.f32 %v7062_v34, %v7976_v16  ;;  %v153_v36 = vpop.f32.mrb[1].mxu0 }
 0x106   :  { %v7996_v37 = vadd.f32 %v7976_v16, %v153_v36  ;;  %v6656_v36 = vmul.f32 -1.442695, %v7925_v5 }
 0x107   :  { %7098 = vmatpush3.xpose.msk.msra.mxu1 %vm450_vm1, %v7993_v35 }
 0x108   :  { %v8000_v38 = vpop.f32.mrb[2].mxu0  ;;  %7093 = vmatpush3.xpose.msk.msra.mxu0 %vm450_vm1, %v7996_v37  ;;  %7107 = vmatprep.subr.mxu1 %v9008_v30  ;;  %7637 = vpow2.f32 %v6656_v36 }
 0x109   :  { %v8005_v39 = vpop.f32.mrb[3].mxu0  ;;  %7102 = vmatprep.subr.mxu0 %v9008_v30 }
 0x10c   :  { %v8008_v40 = vpop.f32.mrb[4].mxu0 }
 0x10d   :  { %v8010_v41 = vpop.f32.mrb[5].mxu0  ;;  %v8074_v57 = vadd.f32 %v8008_v40, %v7976_v16 }
 0x110   :  { %v8012_v42 = vpop.f32.mrb[6].mxu0 }
 0x111   :  { %v8014_v43 = vpop.f32.mrb[7].mxu0  ;;  %v8084_v60 = vadd.f32 %v8012_v42, %v7976_v16 }
 0x17b   :  { %v7082_v45 = vpop.f32.mrb[8].mxu0 }
 0x17c   :  { %v363_v46 = vadd.f32 %v7082_v45, %v8016_v44  ;;  %v357_v47 = vpop.f32.mrb[9].mxu0  ;;  %v7088_v48 = vpop.f32.mrb[0].mxu1  ;;  %v6658_v45 = vmul.f32 -1.442695, %v7939_v11 }
 0x17d   :  { %v377_v49 = vpop.f32.mrb[1].mxu1  ;;  %v383_v52 = vadd.f32 %v7088_v48, %v8016_v44  ;;  %v358_v29 = vadd.f32 %v357_v47, %v8016_v44  ;;  %v6662_v47 = vmul.f32 -1.442695, %v7961_v15  ;;  %v7638_v48 = vpop.eup %7637 }
 0x17e   :  { %406 = vrot.lane.b32.xlu1 %v363_v46, %s7864_s12  ;;  %v378_v32 = vadd.f32 %v377_v49, %v8016_v44  ;;  %v6660_v46 = vmul.f32 -1.442695, %v7949_v13  ;;  %7639 = vpow2.f32 %v6658_v45 }
 0x17f   :  { %v7085_v50 = vpop.f32.mrb[10].mxu0 }
 0x180   :  { %v373_v51 = vadd.f32 %v7085_v50, %v8016_v44  ;;  %v7091_v53 = vpop.f32.mrb[2].mxu1  ;;  %v367_v54 = vpop.f32.mrb[11].mxu0  ;;  %7641 = vpow2.f32 %v6660_v46  ;;  %v216_v50 = vadd.f32 1.0, %v7638_v48 }
 0x181   :  { %v387_v55 = vpop.f32.mrb[3].mxu1  ;;  %v393_v56 = vadd.f32 %v7091_v53, %v8016_v44  ;;  %v368_v33 = vadd.f32 %v367_v54, %v8016_v44  ;;  %7643 = vpow2.f32 %v6662_v47 }
 0x182   :  { %414 = vrot.lane.b32.xlu1 %v383_v52, %s7864_s12  ;;  %410 = vrot.lane.b32.xlu0 %v373_v51, %s7864_s12  ;;  %v388_v34 = vadd.f32 %v387_v55, %v8016_v44  ;;  %7645 = vrcp.f32 %v216_v50  ;;  %v8064_v55 = vadd.f32 %v8000_v38, %v7976_v16 }
 0x186   :  { %418 = vrot.lane.b32.xlu0 %v393_v56, %s7864_s12 }
 0x188   :  { %v7640_v49 = vpop.eup %7639 }
 0x189   :  { %v218_v52 = vadd.f32 1.0, %v7640_v49 }
 0x18a   :  { %v7642_v51 = vpop.eup %7641 }
 0x18b   :  { %v220_v44 = vadd.f32 1.0, %v7642_v51  ;;  %v7644_v53 = vpop.eup %7643  ;;  %7647 = vrcp.f32 %v218_v52 }
 0x18c   :  { %v222_v54 = vadd.f32 1.0, %v7644_v53  ;;  %v7646_v38 = vpop.eup %7645 }
 0x18d   :  { %7649 = vrcp.f32 %v220_v44 }
 0x18e   :  { %7651 = vrcp.f32 %v222_v54 }
 0x195   :  { %v7648_v62 = vpop.eup %7647 }
 0x197   :  { %v7650_v0 = vpop.eup %7649 }
 0x1f0   :  { %v407_v7 = vpop.permute.xlu1 %406 }
 0x1f1   :  { %v429_v17 = vmul.f32 %v7630_v6, %v407_v7  ;;  %v7652_v6 = vpop.eup %7651 }
 0x1f3   :  { %v8034_v19 = vmul.f32 0.35355338, %v429_v17 }
 0x1f4   :  { %v415_v20 = vpop.permute.xlu1 %414  ;;  %v411_v21 = vpop.permute.xlu0 %410 }
 0x1f5   :  { %v433_v22 = vmul.f32 %v7634_v18, %v415_v20  ;;  %v431_v23 = vmul.f32 %v7632_v8, %v411_v21  ;;  %527 = vrot.lane.b32.xlu1 %v8034_v19, %s7864_s12  ;;  %v8123_v21 = vadd.f32 %v7976_v16, %v8005_v39 }
 0x1f7   :  { %v8038_v25 = vmul.f32 0.35355338, %v433_v22  ;;  %v8040_v26 = vmul.f32 0.35355338, %v431_v23 }
 0x1f8   :  { %v419_v27 = vpop.permute.xlu0 %418 }
 0x1f9   :  { %v435_v28 = vmul.f32 %v7636_v24, %v419_v27  ;;  %851 = vrot.lane.b32.xlu1 %v8038_v25, %s7864_s12  ;;  %689 = vrot.lane.b32.xlu0 %v8040_v26, %s7864_s12 }
 0x1fb   :  { %v8047_v31 = vmul.f32 0.35355338, %v435_v28 }
 0x1fd   :  { %1013 = vrot.lane.b32.xlu0 %v8047_v31, %s7864_s12  ;;  %404 = vrot.lane.b32.xlu1 %v358_v29, %s7864_s12 }
 0x201   :  { %408 = vrot.lane.b32.xlu0 %v368_v33, %s7864_s12  ;;  %412 = vrot.lane.b32.xlu1 %v378_v32, %s7864_s12 }
 0x205   :  { %416 = vrot.lane.b32.xlu0 %v388_v34, %s7864_s12 }
 0x267   :  { %v528_v56 = vpop.permute.xlu1 %527 }
 0x268   :  { %7100 = vmatmul.mubr.msk.f32.vlgmr.msra.gmra.mrb[4].mxu1 %vm450_vm1, %v528_v56 }
 0x269   :  { %7108 = vmatpush3.xpose.msk.msra.mxu1 %vm450_vm1, %v8064_v55  ;;  %7109 = vmatprep.mubr.msk.f32.mxu1 %vm7865_vm2, %v9008_v30 }
 0x26a   :  { %7117 = vmatprep.subr.mxu1 %v9008_v30 }
 0x26b   :  { %v852_v58 = vpop.permute.xlu1 %851  ;;  %v690_v59 = vpop.permute.xlu0 %689 }
 0x26c   :  { %7110 = vmatmul.mubr.msk.f32.vlgmr.msra.gmra.mrb[6].mxu1 %vm450_vm1, %v690_v59 }
 0x26d   :  { %7118 = vmatpush3.xpose.msk.msra.mxu1 %vm450_vm1, %v8074_v57  ;;  %7119 = vmatprep.mubr.msk.f32.mxu1 %vm7865_vm2, %v9008_v30 }
 0x26e   :  { %7127 = vmatprep.subr.mxu1 %v9008_v30 }
 0x26f   :  { %v1014_v61 = vpop.permute.xlu0 %1013  ;;  %v405_v40 = vpop.permute.xlu1 %404 }
 0x270   :  { %v428_v63 = vmul.f32 %v7646_v38, %v405_v40  ;;  %7120 = vmatmul.mubr.msk.f32.vlgmr.msra.gmra.mrb[8].mxu1 %vm450_vm1, %v852_v58 }
 0x271   :  { %7128 = vmatpush3.xpose.msk.msra.mxu1 %vm450_vm1, %v8084_v60  ;;  %7129 = vmatprep.mubr.msk.f32.mxu1 %vm7865_vm2, %v9008_v30 }
 0x272   :  { %v8091_v1 = vmul.f32 0.35355338, %v428_v63  ;;  %7137 = vmatprep.subr.mxu1 %v9008_v30 }
 0x273   :  { %v409_v2 = vpop.permute.xlu0 %408  ;;  %v413_v42 = vpop.permute.xlu1 %412 }
 0x274   :  { %v430_v3 = vmul.f32 %v7648_v62, %v409_v2  ;;  %v432_v4 = vmul.f32 %v7650_v0, %v413_v42  ;;  %7130 = vmatmul.mubr.msk.f32.vlgmr.msra.gmra.mrb[10].mxu1 %vm450_vm1, %v1014_v61  ;;  %445 = vrot.lane.b32.xlu1 %v8091_v1, %s7864_s12 }
 0x275   :  { %7138 = vmatpush3.msra.mxu1 %v7993_v35  ;;  %7139 = vmatprep.mubr.msk.f32.mxu1 %vm7865_vm2, %v9008_v30 }
 0x276   :  { %v8100_v7 = vmul.f32 0.35355338, %v430_v3  ;;  %v8102_v8 = vmul.f32 0.35355338, %v432_v4  ;;  %7147 = vmatprep.subr.mxu1 %v9008_v30 }
 0x277   :  { %v417_v17 = vpop.permute.xlu0 %416 }
 0x278   :  { %v434_v18 = vmul.f32 %v7652_v6, %v417_v17  ;;  %608 = vrot.lane.b32.xlu0 %v8100_v7, %s7864_s12  ;;  %770 = vrot.lane.b32.xlu1 %v8102_v8, %s7864_s12 }
 0x27a   :  { %v8109_v20 = vmul.f32 0.35355338, %v434_v18 }
 0x27c   :  { %932 = vrot.lane.b32.xlu0 %v8109_v20, %s7864_s12  ;;  %529 = vrot.lane.b32.xlu1 %v7932_v9, %s7866_s13  ;;  %v8133_v9 = vadd.f32 %v7976_v16, %v8010_v41 }
 0x280   :  { %691 = vrot.lane.b32.xlu0 %v7937_v10, %s7866_s13  ;;  %853 = vrot.lane.b32.xlu1 %v7945_v12, %s7866_s13  ;;  %v8143_v12 = vadd.f32 %v7976_v16, %v8014_v43 }
 0x284   :  { %1015 = vrot.lane.b32.xlu0 %v7957_v14, %s7866_s13 }
 0x2e6   :  { %v446_v22 = vpop.permute.xlu1 %445 }
 0x2e7   :  { %7095 = vmatmul.mubr.msk.f32.vlgmr.msra.gmra.mrb[12].mxu0 %vm450_vm1, %v446_v22 }
 0x2e8   :  { %7103 = vmatpush3.xpose.msk.msra.mxu0 %vm450_vm1, %v8123_v21  ;;  %7104 = vmatprep.mubr.msk.f32.mxu0 %vm7865_vm2, %v9008_v30 }
 0x2e9   :  { %7112 = vmatprep.subr.mxu0 %v9008_v30 }
 0x2ea   :  { %v609_v10 = vpop.permute.xlu0 %608  ;;  %v771_v14 = vpop.permute.xlu1 %770 }
 0x2eb   :  { %7105 = vmatmul.mubr.msk.f32.vlgmr.msra.gmra.mrb[14].mxu0 %vm450_vm1, %v609_v10 }
 0x2ec   :  { %7113 = vmatpush3.xpose.msk.msra.mxu0 %vm450_vm1, %v8133_v9  ;;  %7114 = vmatprep.mubr.msk.f32.mxu0 %vm7865_vm2, %v9008_v30 }
 0x2ed   :  { %7122 = vmatprep.subr.mxu0 %v9008_v30 }
 0x2ee   :  { %v933_v39 = vpop.permute.xlu0 %932  ;;  %v8156_v16 = vpop.permute.xlu1 %529 }
 0x2ef   :  { %7115 = vmatmul.mubr.msk.f32.vlgmr.msra.gmra.mrb[16].mxu0 %vm450_vm1, %v771_v14 }
 0x2f0   :  { %7123 = vmatpush3.xpose.msk.msra.mxu0 %vm450_vm1, %v8143_v12  ;;  %7124 = vmatprep.mubr.msk.f32.mxu0 %vm7865_vm2, %v9008_v30 }
 0x2f1   :  { %7132 = vmatprep.subr.mxu0 %v9008_v30 }
 0x2f2   :  { %v8159_v24 = vpop.permute.xlu0 %691  ;;  %v8163_v33 = vpop.permute.xlu1 %853 }
 0x2f3   :  { %7125 = vmatmul.mubr.msk.f32.vlgmr.msra.gmra.mrb[18].mxu0 %vm450_vm1, %v933_v39  ;;  %9012 = vst [vmem:[#allocation11_spill] sm:$0xff] %v8159_v24 }
 0x2f4   :  { %7133 = vmatpush3.msra.mxu0 %v7996_v37  ;;  %7134 = vmatprep.mubr.msk.f32.mxu0 %vm7865_vm2, %v9008_v30 }
 0x2f5   :  { %7142 = vmatprep.subr.mxu0 %v9008_v30 }
 0x2f6   :  { %v8167_v47 = vpop.permute.xlu0 %1015 }
 0x33b   :  { %v603_v41 = vpop.f32.mrb[4].mxu1 }
 0x33c   :  { %v7101_v43 = vpop.f32.mrb[5].mxu1  ;;  %v604_v23 = vadd.f32 %v603_v41, %v8156_v16 }
 0x33e   :  { %v1096_v27 = vsel %vm450_vm1, %v604_v23, -inf }
 0x33f   :  { %v765_v28 = vpop.f32.mrb[6].mxu1  ;;  %1097 = vmax.xlane.f32.xlu1 %v1096_v27 }
 0x340   :  { %v7111_v29 = vpop.f32.mrb[7].mxu1  ;;  %v766_v32 = vadd.f32 %v765_v28, %v8159_v24 }
 0x342   :  { %v1102_v34 = vsel %vm450_vm1, %v766_v32, -inf }
 0x343   :  { %v927_v36 = vpop.f32.mrb[8].mxu1  ;;  %1103 = vmax.xlane.f32.xlu0 %v1102_v34 }
 0x344   :  { %v7121_v45 = vpop.f32.mrb[9].mxu1  ;;  %v928_v46 = vadd.f32 %v927_v36, %v8163_v33 }
 0x346   :  { %v1108_v48 = vsel %vm450_vm1, %v928_v46, -inf }
 0x347   :  { %v1089_v49 = vpop.f32.mrb[10].mxu1  ;;  %1109 = vmax.xlane.f32.xlu0 %v1108_v48 }
 0x348   :  { %v7131_v50 = vpop.f32.mrb[11].mxu1  ;;  %v1090_v51 = vadd.f32 %v1089_v49, %v8167_v47 }
 0x34a   :  { %v1114_v52 = vsel %vm450_vm1, %v1090_v51, -inf }
 0x34b   :  { %1115 = vmax.xlane.f32.xlu1 %v1114_v52 }
 0x3ba   :  { %v8172_v44 = vpop.f32.mrb[12].mxu0 }
 0x3bb   :  { %v7096_v53 = vpop.f32.mrb[13].mxu0 }
 0x3be   :  { %v684_v54 = vpop.f32.mrb[14].mxu0 }
 0x3bf   :  { %v7106_v56 = vpop.f32.mrb[15].mxu0 }
 0x3c2   :  { %v846_v58 = vpop.f32.mrb[16].mxu0 }
 0x3c3   :  { %v7116_v59 = vpop.f32.mrb[17].mxu0 }
 0x3c6   :  { %v8174_v38 = vpop.f32.mrb[18].mxu0 }
 0x3c7   :  { %v7126_v61 = vpop.f32.mrb[19].mxu0 }
 0x3cc   :  { %v1098_v40 = vpop.xlane.xlu1 %1097 }
 0x3cd   :  { %v1118_v62 = vsub.f32 %v604_v23, %v1098_v40 }
 0x3cf   :  { %v1127_v63 = vmul.f32 1.442695, %v1118_v62 }
 0x3d0   :  { %v1104_v0 = vpop.xlane.xlu0 %1103 }
 0x3d1   :  { %7653 = vpow2.f32 %v1127_v63  ;;  %v1120_v2 = vsub.f32 %v766_v32, %v1104_v0 }
 0x3d3   :  { %v1131_v42 = vmul.f32 1.442695, %v1120_v2 }
 0x3d4   :  { %v1110_v3 = vpop.xlane.xlu0 %1109 }
 0x3d5   :  { %7655 = vpow2.f32 %v1131_v42  ;;  %v1122_v4 = vsub.f32 %v928_v46, %v1110_v3 }
 0x3d7   :  { %v1135_v6 = vmul.f32 1.442695, %v1122_v4 }
 0x3d9   :  { %7657 = vpow2.f32 %v1135_v6 }
 0x3db   :  { %v7654_v17 = vpop.eup %7653 }
 0x3dc   :  { %v1144_v18 = vsel %vm450_vm1, %v7654_v17, 0.0 }
 0x3dd   :  { %1145 = vadd.xlane.f32.xlu0 %v1144_v18 }
 0x3df   :  { %v7656_v22 = vpop.eup %7655 }
 0x3e0   :  { %v1150_v10 = vsel %vm450_vm1, %v7656_v22, 0.0 }
 0x3e1   :  { %1151 = vadd.xlane.f32.xlu1 %v1150_v10 }
 0x3e3   :  { %v7658_v14 = vpop.eup %7657 }
 0x3e4   :  { %v1156_v39 = vsel %vm450_vm1, %v7658_v14, 0.0 }
 0x3e5   :  { %1157 = vadd.xlane.f32.xlu0 %v1156_v39 }
 0x3f2   :  { %610 = vrot.lane.b32.xlu1 %v7939_v11, %s7866_s13  ;;  %v1116_v11 = vpop.xlane.xlu1 %1115 }
 0x3f6   :  { %772 = vrot.lane.b32.xlu1 %v7949_v13, %s7866_s13  ;;  %v1124_v13 = vsub.f32 %v1090_v51, %v1116_v11 }
 0x3fa   :  { %1845 = vrot.lane.b32.xlu1 %v7993_v35, %s7867_s14 }
 0x3fb   :  { %447 = vrot.lane.b32.xlu0 %v7925_v5, %s7866_s13  ;;  %v1139_v5 = vmul.f32 1.442695, %v1124_v13 }
 0x3fd   :  { %7659 = vpow2.f32 %v1139_v5 }
 0x3fe   :  { %2001 = vrot.lane.b32.xlu1 %v8064_v55, %s7867_s14 }
 0x3ff   :  { %934 = vrot.lane.b32.xlu0 %v7961_v15, %s7866_s13 }
 0x403   :  { %1843 = vrot.lane.b32.xlu0 %v8034_v19, %s7868_s15 }
 0x407   :  { %1999 = vrot.lane.b32.xlu0 %v8040_v26, %s7868_s15  ;;  %v7660_v41 = vpop.eup %7659 }
 0x408   :  { %v1162_v15 = vsel %vm450_vm1, %v7660_v41, 0.0 }
 0x40b   :  { %2155 = vrot.lane.b32.xlu0 %v8038_v25, %s7868_s15 }
 0x40f   :  { %2311 = vrot.lane.b32.xlu0 %v8047_v31, %s7868_s15 }
 0x422   :  { %1163 = vadd.xlane.f32.xlu1 %v1162_v15 }
 0x433   :  { %2157 = vrot.lane.b32.xlu1 %v8074_v57, %s7867_s14 }
 0x437   :  { %2313 = vrot.lane.b32.xlu1 %v8084_v60, %s7867_s14 }
 0x46a   :  { %v1146_v43 = vpop.xlane.xlu0 %1145 }
 0x46b   :  { %7661 = vrcp.f32 %v1146_v43 }
 0x46e   :  { %v1152_v23 = vpop.xlane.xlu1 %1151 }
 0x46f   :  { %7663 = vrcp.f32 %v1152_v23 }
 0x472   :  { %v1158_v27 = vpop.xlane.xlu0 %1157  ;;  %v8204_v28 = vpop.permute.xlu1 %610 }
 0x473   :  { %9013 = vst [vmem:[#allocation12_spill] sm:$0xff] %v8204_v28  ;;  %7665 = vrcp.f32 %v1158_v27  ;;  %v8207_v29 = vadd.f32 %v684_v54, %v8204_v28 }
 0x475   :  { %v7662_v32 = vpop.eup %7661  ;;  %v1099_v34 = vsel %vm450_vm1, %v8207_v29, -inf }
 0x476   :  { %v8211_v36 = vpop.permute.xlu0 %447  ;;  %v8213_v45 = vpop.permute.xlu1 %772  ;;  %1100 = vmax.xlane.f32.xlu0 %v1099_v34  ;;  %v1174_v46 = vmul.f32 %v7662_v32, %v7654_v17 }
 0x477   :  { %v8217_v48 = vadd.f32 %v8172_v44, %v8211_v36  ;;  %v8220_v49 = vadd.f32 %v846_v58, %v8213_v45 }
 0x478   :  { %7140 = vmatmul.mubr.msk.f32.vlgmr.msra.gmra.mrb[12].mxu1 %vm450_vm1, %v1174_v46 }
 0x479   :  { %v7664_v50 = vpop.eup %7663  ;;  %7148 = vmatpush3.msra.mxu1 %v8064_v55  ;;  %v1093_v51 = vsel %vm450_vm1, %v8217_v48, -inf  ;;  %v1105_v52 = vsel %vm450_vm1, %v8220_v49, -inf  ;;  %7149 = vmatprep.mubr.msk.f32.mxu1 %vm7865_vm2, %v9008_v30 }
 0x47a   :  { %v8230_v53 = vpop.permute.xlu0 %934  ;;  %1094 = vmax.xlane.f32.xlu1 %v1093_v51  ;;  %1106 = vmax.xlane.f32.xlu0 %v1105_v52  ;;  %v1176_v44 = vmul.f32 %v7664_v50, %v7656_v22 }
 0x47b   :  { %7157 = vmatprep.subr.mxu1 %v9008_v30  ;;  %v8235_v54 = vadd.f32 %v8174_v38, %v8230_v53  ;;  %v1846_v38 = vpop.permute.xlu1 %1845 }
 0x47c   :  { %7150 = vmatmul.mubr.msk.f32.vlgmr.msra.gmra.mrb[14].mxu1 %vm450_vm1, %v1176_v44 }
 0x47d   :  { %v7666_v56 = vpop.eup %7665  ;;  %7158 = vmatpush3.msra.mxu1 %v8074_v57  ;;  %v1111_v58 = vsel %vm450_vm1, %v8235_v54, -inf  ;;  %7159 = vmatprep.mubr.msk.f32.mxu1 %vm7865_vm2, %v9008_v30 }
 0x47e   :  { %1112 = vmax.xlane.f32.xlu1 %v1111_v58  ;;  %7167 = vmatprep.subr.mxu1 %v9008_v30  ;;  %v1178_v59 = vmul.f32 %v7666_v56, %v7658_v14  ;;  %v1844_v63 = vpop.permute.xlu0 %1843 }
 0x47f   :  { %v8249_v61 = vpop.permute.xlu1 %2001 }
 0x480   :  { %7160 = vmatmul.mubr.msk.f32.vlgmr.msra.gmra.mrb[16].mxu1 %vm450_vm1, %v1178_v59 }
 0x481   :  { %7168 = vmatpush3.msra.mxu1 %v8084_v60  ;;  %7169 = vmatprep.mubr.msk.f32.mxu1 %vm7865_vm2, %v9008_v30 }
 0x482   :  { %7177 = vmatprep.subr.mxu1 %v9008_v30  ;;  %v2000_v2 = vpop.permute.xlu0 %1999 }
 0x486   :  { %v2156_v3 = vpop.permute.xlu0 %2155 }
 0x48a   :  { %v2312_v6 = vpop.permute.xlu0 %2311 }
 0x4af   :  { %v1164_v40 = vpop.xlane.xlu1 %1163 }
 0x4b0   :  { %7667 = vrcp.f32 %v1164_v40 }
 0x4b3   :  { %v8261_v42 = vpop.permute.xlu1 %2157 }
 0x4b7   :  { %v8270_v4 = vpop.permute.xlu1 %2313 }
 0x4ba   :  { %v7668_v62 = vpop.eup %7667 }
 0x4bb   :  { %v1180_v0 = vmul.f32 %v7668_v62, %v7660_v41 }
 0x4bd   :  { %7170 = vmatmul.mubr.msk.f32.vlgmr.msra.gmra.mrb[18].mxu1 %vm450_vm1, %v1180_v0 }
 0x4be   :  { %7178 = vmatpush3.xpose.msk.msra.mxu1 %vm450_vm1, %v1846_v38  ;;  %7179 = vmatprep.mubr.msk.f32.mxu1 %vm7865_vm2, %v9008_v30 }
 0x4bf   :  { %7187 = vmatprep.subr.mxu1 %v9008_v30 }
 0x4c1   :  { %7180 = vmatmul.mubr.msk.f32.vlgmr.msra.gmra.mrb[20].mxu1 %vm450_vm1, %v1844_v63 }
 0x4c2   :  { %7188 = vmatpush3.xpose.msk.msra.mxu1 %vm450_vm1, %v8249_v61  ;;  %7189 = vmatprep.mubr.msk.f32.mxu1 %vm7865_vm2, %v9008_v30 }
 0x4c3   :  { %7197 = vmatprep.subr.mxu1 %v9008_v30 }
 0x4c5   :  { %7190 = vmatmul.mubr.msk.f32.vlgmr.msra.gmra.mrb[22].mxu1 %vm450_vm1, %v2000_v2 }
 0x4c6   :  { %7198 = vmatpush3.xpose.msk.msra.mxu1 %vm450_vm1, %v8261_v42  ;;  %7199 = vmatprep.mubr.msk.f32.mxu1 %vm7865_vm2, %v9008_v30 }
 0x4c7   :  { %7207 = vmatprep.subr.mxu1 %v9008_v30 }
 0x4c9   :  { %7200 = vmatmul.mubr.msk.f32.vlgmr.msra.gmra.mrb[24].mxu1 %vm450_vm1, %v2156_v3 }
 0x4ca   :  { %7208 = vmatpush3.xpose.msk.msra.mxu1 %vm450_vm1, %v8270_v4  ;;  %7209 = vmatprep.mubr.msk.f32.mxu1 %vm7865_vm2, %v9008_v30 }
 0x4cb   :  { %7217 = vmatprep.subr.mxu1 %v9008_v30 }
 0x4cd   :  { %7210 = vmatmul.mubr.msk.f32.vlgmr.msra.gmra.mrb[26].mxu1 %vm450_vm1, %v2312_v6 }
 0x4ce   :  { %7218 = vmatpush3.msra.mxu1 %v1846_v38  ;;  %7219 = vmatprep.mubr.msk.f32.mxu1 %vm7865_vm2, %v9008_v30 }
 0x4cf   :  { %7227 = vmatprep.subr.mxu1 %v9008_v30 }
 0x503   :  { %v1101_v17 = vpop.xlane.xlu0 %1100 }
 0x504   :  { %v1119_v18 = vsub.f32 %v8207_v29, %v1101_v17 }
 0x506   :  { %v1129_v22 = vmul.f32 1.442695, %v1119_v18 }
 0x507   :  { %v1095_v10 = vpop.xlane.xlu1 %1094  ;;  %v1107_v14 = vpop.xlane.xlu0 %1106 }
 0x508   :  { %7669 = vpow2.f32 %v1129_v22  ;;  %v1117_v39 = vsub.f32 %v8217_v48, %v1095_v10  ;;  %v1121_v11 = vsub.f32 %v8220_v49, %v1107_v14 }
 0x50a   :  { %v1125_v13 = vmul.f32 1.442695, %v1117_v39  ;;  %v1133_v5 = vmul.f32 1.442695, %v1121_v11 }
 0x50b   :  { %v1113_v32 = vpop.xlane.xlu1 %1112 }
 0x50c   :  { %7671 = vpow2.f32 %v1125_v13  ;;  %v1123_v34 = vsub.f32 %v8235_v54, %v1113_v32 }
 0x50d   :  { %7673 = vpow2.f32 %v1133_v5 }
 0x50e   :  { %v1137_v46 = vmul.f32 1.442695, %v1123_v34 }
 0x510   :  { %7675 = vpow2.f32 %v1137_v46 }
 0x512   :  { %v8285_v41 = vpop.eup %7669 }
 0x513   :  { %v1147_v15 = vsel %vm450_vm1, %v8285_v41, 0.0 }
 0x514   :  { %1148 = vadd.xlane.f32.xlu1 %v1147_v15 }
 0x516   :  { %v7672_v43 = vpop.eup %7671 }
 0x517   :  { %v1141_v23 = vsel %vm450_vm1, %v7672_v43, 0.0  ;;  %v8290_v27 = vpop.eup %7673 }
 0x518   :  { %1142 = vadd.xlane.f32.xlu0 %v1141_v23  ;;  %v1153_v29 = vsel %vm450_vm1, %v8290_v27, 0.0 }
 0x51a   :  { %v8307_v48 = vpop.eup %7675 }
 0x51b   :  { %v1159_v51 = vsel %vm450_vm1, %v8307_v48, 0.0 }
 0x51c   :  { %1154 = vadd.xlane.f32.xlu0 %v1153_v29 }
 0x525   :  { %1765 = vrot.lane.b32.xlu1 %v8091_v1, %s7868_s15 }
 0x529   :  { %1923 = vrot.lane.b32.xlu1 %v8123_v21, %s7867_s14 }
 0x532   :  { %1767 = vrot.lane.b32.xlu0 %v7996_v37, %s7867_s14 }
 0x536   :  { %1921 = vrot.lane.b32.xlu0 %v8100_v7, %s7868_s15 }
 0x53a   :  { %2077 = vrot.lane.b32.xlu0 %v8102_v8, %s7868_s15 }
 0x53e   :  { %2233 = vrot.lane.b32.xlu0 %v8109_v20, %s7868_s15 }
 0x54b   :  { %v8309_v49 = vpop.f32.mrb[12].mxu1 }
 0x54c   :  { %v7141_v50 = vpop.f32.mrb[13].mxu1 }
 0x54d   :  { %1160 = vadd.xlane.f32.xlu1 %v1159_v51 }
 0x54f   :  { %v8313_v52 = vpop.f32.mrb[14].mxu1 }
 0x550   :  { %v7151_v44 = vpop.f32.mrb[15].mxu1 }
 0x553   :  { %v8315_v54 = vpop.f32.mrb[16].mxu1 }
 0x554   :  { %v7161_v56 = vpop.f32.mrb[17].mxu1 }
 0x55e   :  { %2079 = vrot.lane.b32.xlu1 %v8133_v9, %s7867_s14 }
 0x562   :  { %2235 = vrot.lane.b32.xlu1 %v8143_v12, %s7867_s14 }
 0x590   :  { %v8321_v58 = vpop.f32.mrb[18].mxu1 }
 0x591   :  { %v7171_v59 = vpop.f32.mrb[19].mxu1 }
 0x594   :  { %v1917_v38 = vpop.f32.mrb[20].mxu1 }
 0x595   :  { %v8324_v40 = vadd.f32 %v1917_v38, %v8156_v16  ;;  %v7181_v62 = vpop.f32.mrb[21].mxu1 }
 0x597   :  { %v2392_v63 = vsel %vm450_vm1, %v8324_v40, -inf }
 0x598   :  { %v2073_v0 = vpop.f32.mrb[22].mxu1  ;;  %2393 = vmax.xlane.f32.xlu1 %v2392_v63 }
 0x599   :  { %v8329_v2 = vadd.f32 %v2073_v0, %v8159_v24  ;;  %v7191_v3 = vpop.f32.mrb[23].mxu1 }
 0x59b   :  { %v2398_v6 = vsel %vm450_vm1, %v8329_v2, -inf }
 0x59c   :  { %v2229_v17 = vpop.f32.mrb[24].mxu1  ;;  %2399 = vmax.xlane.f32.xlu0 %v2398_v6 }
 0x59d   :  { %v8334_v18 = vadd.f32 %v2229_v17, %v8163_v33  ;;  %v7201_v22 = vpop.f32.mrb[25].mxu1 }
 0x59f   :  { %v2404_v10 = vsel %vm450_vm1, %v8334_v18, -inf }
 0x5a0   :  { %v2385_v14 = vpop.f32.mrb[26].mxu1  ;;  %2405 = vmax.xlane.f32.xlu0 %v2404_v10 }
 0x5a1   :  { %v8339_v39 = vadd.f32 %v2385_v14, %v8167_v47  ;;  %v7211_v11 = vpop.f32.mrb[27].mxu1  ;;  %v1149_v5 = vpop.xlane.xlu1 %1148 }
 0x5a3   :  { %v2410_v13 = vsel %vm450_vm1, %v8339_v39, -inf }
 0x5a4   :  { %2411 = vmax.xlane.f32.xlu1 %v2410_v13 }
 0x5a5   :  { %v1143_v15 = vpop.xlane.xlu0 %1142 }
 0x5a6   :  { %7677 = vrcp.f32 %v1143_v15 }
 0x5a7   :  { %7679 = vrcp.f32 %v1149_v5 }
 0x5a9   :  { %v1155_v23 = vpop.xlane.xlu0 %1154 }
 0x5aa   :  { %7681 = vrcp.f32 %v1155_v23 }
 0x5ad   :  { %v1768_v59 = vpop.permute.xlu0 %1767 }
 0x5b0   :  { %v7678_v29 = vpop.eup %7677 }
 0x5b1   :  { %v1173_v32 = vmul.f32 %v7678_v29, %v7672_v43  ;;  %v7680_v34 = vpop.eup %7679  ;;  %v1922_v38 = vpop.permute.xlu0 %1921 }
 0x5b2   :  { %v1175_v46 = vmul.f32 %v7680_v34, %v8285_v41  ;;  %v1766_v41 = vpop.permute.xlu1 %1765 }
 0x5b3   :  { %7135 = vmatmul.mubr.msk.f32.vlgmr.msra.gmra.mrb[20].mxu0 %vm450_vm1, %v1173_v32 }
 0x5b4   :  { %7143 = vmatpush3.msra.mxu0 %v8123_v21  ;;  %7144 = vmatprep.mubr.msk.f32.mxu0 %vm7865_vm2, %v9008_v30  ;;  %v7682_v50 = vpop.eup %7681 }
 0x5b5   :  { %7152 = vmatprep.subr.mxu0 %v9008_v30  ;;  %v1177_v43 = vmul.f32 %v7682_v50, %v8290_v27 }
 0x5b6   :  { %v8360_v51 = vpop.permute.xlu1 %1923 }
 0x5b7   :  { %7145 = vmatmul.mubr.msk.f32.vlgmr.msra.gmra.mrb[22].mxu0 %vm450_vm1, %v1175_v46 }
 0x5b8   :  { %7153 = vmatpush3.msra.mxu0 %v8133_v9  ;;  %7154 = vmatprep.mubr.msk.f32.mxu0 %vm7865_vm2, %v9008_v30 }
 0x5b9   :  { %7162 = vmatprep.subr.mxu0 %v9008_v30 }
 0x5bb   :  { %7155 = vmatmul.mubr.msk.f32.vlgmr.msra.gmra.mrb[24].mxu0 %vm450_vm1, %v1177_v43 }
 0x5bc   :  { %7163 = vmatpush3.msra.mxu0 %v8143_v12  ;;  %7164 = vmatprep.mubr.msk.f32.mxu0 %vm7865_vm2, %v9008_v30 }
 0x5bd   :  { %7172 = vmatprep.subr.mxu0 %v9008_v30 }
 0x5da   :  { %v1161_v44 = vpop.xlane.xlu1 %1160 }
 0x5db   :  { %7683 = vrcp.f32 %v1161_v44 }
 0x5de   :  { %v8373_v62 = vpop.permute.xlu1 %2079 }
 0x5e2   :  { %v8382_v63 = vpop.permute.xlu1 %2235 }
 0x5e5   :  { %v7684_v56 = vpop.eup %7683 }
 0x5e6   :  { %v1179_v27 = vmul.f32 %v7684_v56, %v8307_v48  ;;  %v2078_v48 = vpop.permute.xlu0 %2077 }
 0x5e8   :  { %7165 = vmatmul.mubr.msk.f32.vlgmr.msra.gmra.mrb[26].mxu0 %vm450_vm1, %v1179_v27 }
 0x5e9   :  { %7173 = vmatpush3.xpose.msk.msra.mxu0 %vm450_vm1, %v1768_v59  ;;  %7174 = vmatprep.mubr.msk.f32.mxu0 %vm7865_vm2, %v9008_v30 }
 0x5ea   :  { %7182 = vmatprep.subr.mxu0 %v9008_v30  ;;  %v2234_v0 = vpop.permute.xlu0 %2233 }
 0x5ec   :  { %7175 = vmatmul.mubr.msk.f32.vlgmr.msra.gmra.mrb[28].mxu0 %vm450_vm1, %v1766_v41 }
 0x5ed   :  { %7183 = vmatpush3.xpose.msk.msra.mxu0 %vm450_vm1, %v8360_v51  ;;  %7184 = vmatprep.mubr.msk.f32.mxu0 %vm7865_vm2, %v9008_v30 }
 0x5ee   :  { %7192 = vmatprep.subr.mxu0 %v9008_v30 }
 0x5f0   :  { %7185 = vmatmul.mubr.msk.f32.vlgmr.msra.gmra.mrb[30].mxu0 %vm450_vm1, %v1922_v38 }
 0x5f1   :  { %7193 = vmatpush3.xpose.msk.msra.mxu0 %vm450_vm1, %v8373_v62  ;;  %7194 = vmatprep.mubr.msk.f32.mxu0 %vm7865_vm2, %v9008_v30 }
 0x5f2   :  { %7202 = vmatprep.subr.mxu0 %v9008_v30 }
 0x5f4   :  { %7195 = vmatmul.mubr.msk.f32.vlgmr.msra.gmra.mrb[32].mxu0 %vm450_vm1, %v2078_v48 }
 0x5f5   :  { %7203 = vmatpush3.xpose.msk.msra.mxu0 %vm450_vm1, %v8382_v63  ;;  %7204 = vmatprep.mubr.msk.f32.mxu0 %vm7865_vm2, %v9008_v30 }
 0x5f6   :  { %7212 = vmatprep.subr.mxu0 %v9008_v30 }
 0x5f8   :  { %7205 = vmatmul.mubr.msk.f32.vlgmr.msra.gmra.mrb[34].mxu0 %vm450_vm1, %v2234_v0 }
 0x5f9   :  { %7213 = vmatpush3.msra.mxu0 %v1768_v59  ;;  %7214 = vmatprep.mubr.msk.f32.mxu0 %vm7865_vm2, %v9008_v30 }
 0x5fa   :  { %7222 = vmatprep.subr.mxu0 %v9008_v30 }
 0x625   :  { %v2394_v3 = vpop.xlane.xlu1 %2393 }
 0x626   :  { %v2414_v6 = vsub.f32 %v8324_v40, %v2394_v3 }
 0x628   :  { %v2423_v17 = vmul.f32 1.442695, %v2414_v6 }
 0x629   :  { %v2400_v22 = vpop.xlane.xlu0 %2399 }
 0x62a   :  { %7685 = vpow2.f32 %v2423_v17  ;;  %v2416_v10 = vsub.f32 %v8329_v2, %v2400_v22 }
 0x62c   :  { %v2427_v14 = vmul.f32 1.442695, %v2416_v10 }
 0x62d   :  { %v2406_v11 = vpop.xlane.xlu0 %2405 }
 0x62e   :  { %7687 = vpow2.f32 %v2427_v14  ;;  %v2418_v13 = vsub.f32 %v8334_v18, %v2406_v11 }
 0x630   :  { %v2431_v5 = vmul.f32 1.442695, %v2418_v13 }
 0x631   :  { %v2412_v18 = vpop.xlane.xlu1 %2411 }
 0x632   :  { %7689 = vpow2.f32 %v2431_v5  ;;  %v2420_v34 = vsub.f32 %v8339_v39, %v2412_v18 }
 0x634   :  { %v8397_v15 = vpop.eup %7685  ;;  %v2435_v46 = vmul.f32 1.442695, %v2420_v34 }
 0x635   :  { %v2440_v23 = vsel %vm450_vm1, %v8397_v15, 0.0 }
 0x636   :  { %2441 = vadd.xlane.f32.xlu0 %v2440_v23  ;;  %7691 = vpow2.f32 %v2435_v46 }
 0x638   :  { %v8401_v29 = vpop.eup %7687 }
 0x639   :  { %v2446_v40 = vsel %vm450_vm1, %v8401_v29, 0.0 }
 0x63a   :  { %2447 = vadd.xlane.f32.xlu1 %v2446_v40 }
 0x63c   :  { %v8405_v2 = vpop.eup %7689 }
 0x63d   :  { %v2452_v32 = vsel %vm450_vm1, %v8405_v2, 0.0 }
 0x63e   :  { %2453 = vadd.xlane.f32.xlu0 %v2452_v32 }
 0x640   :  { %v8419_v50 = vpop.eup %7691 }
 0x641   :  { %v2458_v43 = vsel %vm450_vm1, %v8419_v50, 0.0 }
 0x64b   :  { %3333 = vrot.lane.b32.xlu1 %v8091_v1, %s7869_s16 }
 0x64f   :  { %3413 = vrot.lane.b32.xlu1 %v7993_v35, %s7870_s17 }
 0x654   :  { %3335 = vrot.lane.b32.xlu0 %v7996_v37, %s7870_s17 }
 0x658   :  { %3411 = vrot.lane.b32.xlu0 %v8034_v19, %s7869_s16 }
 0x65c   :  { %3489 = vrot.lane.b32.xlu0 %v8100_v7, %s7869_s16 }
 0x660   :  { %3567 = vrot.lane.b32.xlu0 %v8040_v26, %s7869_s16 }
 0x664   :  { %3645 = vrot.lane.b32.xlu0 %v8102_v8, %s7869_s16 }
 0x668   :  { %3723 = vrot.lane.b32.xlu0 %v8038_v25, %s7869_s16 }
 0x66c   :  { %3801 = vrot.lane.b32.xlu0 %v8109_v20, %s7869_s16 }
 0x670   :  { %3879 = vrot.lane.b32.xlu0 %v8047_v31, %s7869_s16 }
 0x673   :  { %2459 = vadd.xlane.f32.xlu1 %v2458_v43 }
 0x684   :  { %3491 = vrot.lane.b32.xlu1 %v8123_v21, %s7870_s17 }
 0x686   :  { %v8425_v39 = vpop.f32.mrb[20].mxu0 }
 0x687   :  { %v7136_v41 = vpop.f32.mrb[21].mxu0 }
 0x688   :  { %3569 = vrot.lane.b32.xlu1 %v8064_v55, %s7870_s17 }
 0x68a   :  { %v8428_v44 = vpop.f32.mrb[22].mxu0 }
 0x68b   :  { %v7146_v56 = vpop.f32.mrb[23].mxu0 }
 0x68c   :  { %3647 = vrot.lane.b32.xlu1 %v8133_v9, %s7870_s17 }
 0x68e   :  { %v8431_v59 = vpop.f32.mrb[24].mxu0 }
 0x68f   :  { %v7156_v27 = vpop.f32.mrb[25].mxu0 }
 0x690   :  { %3725 = vrot.lane.b32.xlu1 %v8074_v57, %s7870_s17 }
 0x694   :  { %3803 = vrot.lane.b32.xlu1 %v8143_v12, %s7870_s17 }
 0x698   :  { %3881 = vrot.lane.b32.xlu1 %v8084_v60, %s7870_s17 }
 0x6bb   :  { %v8436_v38 = vpop.f32.mrb[26].mxu0 }
 0x6bc   :  { %v7166_v48 = vpop.f32.mrb[27].mxu0 }
 0x6bf   :  { %v1839_v0 = vpop.f32.mrb[28].mxu0 }
 0x6c0   :  { %v8439_v3 = vadd.f32 %v1839_v0, %v8211_v36  ;;  %v7176_v6 = vpop.f32.mrb[29].mxu0 }
 0x6c2   :  { %v2389_v17 = vsel %vm450_vm1, %v8439_v3, -inf }
 0x6c3   :  { %v2442_v22 = vpop.xlane.xlu0 %2441  ;;  %2390 = vmax.xlane.f32.xlu1 %v2389_v17  ;;  %v1995_v10 = vpop.f32.mrb[30].mxu0 }
 0x6c4   :  { %7693 = vrcp.f32 %v2442_v22  ;;  %v8444_v14 = vadd.f32 %v1995_v10, %v8204_v28  ;;  %v7186_v11 = vpop.f32.mrb[31].mxu0 }
 0x6c6   :  { %v2395_v13 = vsel %vm450_vm1, %v8444_v14, -inf }
 0x6c7   :  { %v2448_v5 = vpop.xlane.xlu1 %2447  ;;  %2396 = vmax.xlane.f32.xlu0 %v2395_v13  ;;  %v2151_v23 = vpop.f32.mrb[32].mxu0 }
 0x6c8   :  { %7695 = vrcp.f32 %v2448_v5  ;;  %v8449_v40 = vadd.f32 %v2151_v23, %v8213_v45  ;;  %v7196_v32 = vpop.f32.mrb[33].mxu0 }
 0x6ca   :  { %v2401_v18 = vsel %vm450_vm1, %v8449_v40, -inf }
 0x6cb   :  { %v2454_v34 = vpop.xlane.xlu0 %2453  ;;  %2402 = vmax.xlane.f32.xlu0 %v2401_v18  ;;  %v2307_v46 = vpop.f32.mrb[34].mxu0 }
 0x6cc   :  { %7697 = vrcp.f32 %v2454_v34  ;;  %v8454_v43 = vadd.f32 %v2307_v46, %v8230_v53  ;;  %v7206_v41 = vpop.f32.mrb[35].mxu0 }
 0x6ce   :  { %v7694_v56 = vpop.eup %7693  ;;  %v2407_v48 = vsel %vm450_vm1, %v8454_v43, -inf }
 0x6cf   :  { %v2470_v27 = vmul.f32 %v7694_v56, %v8397_v15  ;;  %2408 = vmax.xlane.f32.xlu1 %v2407_v48 }
 0x6d1   :  { %7220 = vmatmul.mubr.msk.f32.vlgmr.msra.gmra.mrb[28].mxu1 %vm450_vm1, %v2470_v27 }
 0x6d2   :  { %v7696_v0 = vpop.eup %7695  ;;  %7228 = vmatpush3.msra.mxu1 %v8249_v61  ;;  %7229 = vmatprep.mubr.msk.f32.mxu1 %vm7865_vm2, %v9008_v30  ;;  %v3334_v61 = vpop.permute.xlu1 %3333 }
 0x6d3   :  { %v2472_v6 = vmul.f32 %v7696_v0, %v8401_v29  ;;  %7237 = vmatprep.subr.mxu1 %v9008_v30 }
 0x6d5   :  { %7230 = vmatmul.mubr.msk.f32.vlgmr.msra.gmra.mrb[30].mxu1 %vm450_vm1, %v2472_v6 }
 0x6d6   :  { %v7698_v17 = vpop.eup %7697  ;;  %7238 = vmatpush3.msra.mxu1 %v8261_v42  ;;  %7239 = vmatprep.mubr.msk.f32.mxu1 %vm7865_vm2, %v9008_v30  ;;  %v3414_v29 = vpop.permute.xlu1 %3413 }
 0x6d7   :  { %v2474_v15 = vmul.f32 %v7698_v17, %v8405_v2  ;;  %7247 = vmatprep.subr.mxu1 %v9008_v30  ;;  %v8476_v42 = vpop.permute.xlu0 %3335 }
 0x6d9   :  { %7240 = vmatmul.mubr.msk.f32.vlgmr.msra.gmra.mrb[32].mxu1 %vm450_vm1, %v2474_v15 }
 0x6da   :  { %7248 = vmatpush3.msra.mxu1 %v8270_v4  ;;  %7249 = vmatprep.mubr.msk.f32.mxu1 %vm7865_vm2, %v9008_v30 }
 0x6db   :  { %7280 = vmatprep.subr.mxu1 %v9008_v30  ;;  %v3412_v10 = vpop.permute.xlu0 %3411 }
 0x6df   :  { %v3490_v4 = vpop.permute.xlu0 %3489 }
 0x700   :  { %v2460_v22 = vpop.xlane.xlu1 %2459 }
 0x701   :  { %7699 = vrcp.f32 %v2460_v22 }
 0x704   :  { %v8479_v13 = vpop.permute.xlu1 %3491 }
 0x708   :  { %v8487_v5 = vpop.permute.xlu1 %3569 }
 0x70b   :  { %v7700_v11 = vpop.eup %7699 }
 0x70c   :  { %v2476_v2 = vmul.f32 %v7700_v11, %v8419_v50  ;;  %v3568_v50 = vpop.permute.xlu0 %3567  ;;  %v8499_v23 = vpop.permute.xlu1 %3647 }
 0x70e   :  { %7250 = vmatmul.mubr.msk.f32.vlgmr.msra.gmra.mrb[34].mxu1 %vm450_vm1, %v2476_v2 }
 0x70f   :  { %7281 = vmatpush3.xpose.msk.msra.mxu1 %vm450_vm1, %v8476_v42  ;;  %7282 = vmatprep.mubr.msk.f32.mxu1 %vm7865_vm2, %v9008_v30 }
 0x710   :  { %7285 = vmatprep.subr.mxu1 %v9008_v30  ;;  %v3646_v32 = vpop.permute.xlu0 %3645  ;;  %v8508_v18 = vpop.permute.xlu1 %3725 }
 0x712   :  { %7283 = vmatmul.mubr.msk.f32.vlgmr.msra.gmra.mrb[36].mxu1 %vm450_vm1, %v3334_v61 }
 0x713   :  { %7286 = vmatpush3.xpose.msk.msra.mxu1 %vm450_vm1, %v3414_v29  ;;  %7287 = vmatprep.mubr.msk.f32.mxu1 %vm7865_vm2, %v9008_v30 }
 0x714   :  { %7290 = vmatprep.subr.mxu1 %v9008_v30  ;;  %v3724_v34 = vpop.permute.xlu0 %3723  ;;  %v8521_v46 = vpop.permute.xlu1 %3803 }
 0x716   :  { %7288 = vmatmul.mubr.msk.f32.vlgmr.msra.gmra.mrb[38].mxu1 %vm450_vm1, %v3412_v10 }
 0x717   :  { %7291 = vmatpush3.xpose.msk.msra.mxu1 %vm450_vm1, %v8479_v13  ;;  %7292 = vmatprep.mubr.msk.f32.mxu1 %vm7865_vm2, %v9008_v30 }
 0x718   :  { %7295 = vmatprep.subr.mxu1 %v9008_v30  ;;  %v3802_v41 = vpop.permute.xlu0 %3801  ;;  %v8530_v56 = vpop.permute.xlu1 %3881 }
 0x71a   :  { %7293 = vmatmul.mubr.msk.f32.vlgmr.msra.gmra.mrb[40].mxu1 %vm450_vm1, %v3490_v4 }
 0x71b   :  { %7296 = vmatpush3.xpose.msk.msra.mxu1 %vm450_vm1, %v8487_v5  ;;  %7297 = vmatprep.mubr.msk.f32.mxu1 %vm7865_vm2, %v9008_v30 }
 0x71c   :  { %7300 = vmatprep.subr.mxu1 %v9008_v30  ;;  %v3880_v27 = vpop.permute.xlu0 %3879 }
 0x71e   :  { %7298 = vmatmul.mubr.msk.f32.vlgmr.msra.gmra.mrb[42].mxu1 %vm450_vm1, %v3568_v50 }
 0x71f   :  { %7301 = vmatpush3.xpose.msk.msra.mxu1 %vm450_vm1, %v8499_v23  ;;  %7302 = vmatprep.mubr.msk.f32.mxu1 %vm7865_vm2, %v9008_v30 }
 0x720   :  { %7305 = vmatprep.subr.mxu1 %v9008_v30 }
 0x722   :  { %7303 = vmatmul.mubr.msk.f32.vlgmr.msra.gmra.mrb[44].mxu1 %vm450_vm1, %v3646_v32 }
 0x723   :  { %7306 = vmatpush3.xpose.msk.msra.mxu1 %vm450_vm1, %v8508_v18  ;;  %7307 = vmatprep.mubr.msk.f32.mxu1 %vm7865_vm2, %v9008_v30 }
 0x724   :  { %7310 = vmatprep.subr.mxu1 %v9008_v30 }
 0x726   :  { %7308 = vmatmul.mubr.msk.f32.vlgmr.msra.gmra.mrb[46].mxu1 %vm450_vm1, %v3724_v34 }
 0x727   :  { %7311 = vmatpush3.xpose.msk.msra.mxu1 %vm450_vm1, %v8521_v46  ;;  %7312 = vmatprep.mubr.msk.f32.mxu1 %vm7865_vm2, %v9008_v30 }
 0x728   :  { %7315 = vmatprep.subr.mxu1 %v9008_v30 }
 0x72a   :  { %7313 = vmatmul.mubr.msk.f32.vlgmr.msra.gmra.mrb[48].mxu1 %vm450_vm1, %v3802_v41 }
 0x72b   :  { %7316 = vmatpush3.xpose.msk.msra.mxu1 %vm450_vm1, %v8530_v56  ;;  %7317 = vmatprep.mubr.msk.f32.mxu1 %vm7865_vm2, %v9008_v30 }
 0x72c   :  { %7325 = vmatprep.subr.mxu1 %v9008_v30 }
 0x72e   :  { %7318 = vmatmul.mubr.msk.f32.vlgmr.msra.gmra.mrb[50].mxu1 %vm450_vm1, %v3880_v27 }
 0x72f   :  { %7326 = vmatpush3.msra.mxu1 %v3414_v29  ;;  %7327 = vmatprep.mubr.msk.f32.mxu1 %vm7865_vm2, %v9008_v30 }
 0x730   :  { %7335 = vmatprep.subr.mxu1 %v9008_v30 }
 0x750   :  { %v2391_v48 = vpop.xlane.xlu1 %2390 }
 0x751   :  { %v2413_v0 = vsub.f32 %v8439_v3, %v2391_v48 }
 0x753   :  { %v2421_v6 = vmul.f32 1.442695, %v2413_v0 }
 0x754   :  { %v2397_v17 = vpop.xlane.xlu0 %2396 }
 0x755   :  { %7701 = vpow2.f32 %v2421_v6  ;;  %v2415_v15 = vsub.f32 %v8444_v14, %v2397_v17 }
 0x757   :  { %v2425_v61 = vmul.f32 1.442695, %v2415_v15 }
 0x758   :  { %v2403_v22 = vpop.xlane.xlu0 %2402 }
 0x759   :  { %7703 = vpow2.f32 %v2425_v61  ;;  %v2417_v10 = vsub.f32 %v8449_v40, %v2403_v22 }
 0x75b   :  { %v2429_v11 = vmul.f32 1.442695, %v2417_v10 }
 0x75c   :  { %v2409_v29 = vpop.xlane.xlu1 %2408 }
 0x75d   :  { %7705 = vpow2.f32 %v2429_v11  ;;  %v2419_v2 = vsub.f32 %v8454_v43, %v2409_v29 }
 0x75f   :  { %v7702_v4 = vpop.eup %7701  ;;  %v2433_v50 = vmul.f32 1.442695, %v2419_v2 }
 0x760   :  { %v2437_v32 = vsel %vm450_vm1, %v7702_v4, 0.0 }
 0x761   :  { %2438 = vadd.xlane.f32.xlu0 %v2437_v32  ;;  %7707 = vpow2.f32 %v2433_v50 }
 0x763   :  { %v7704_v3 = vpop.eup %7703 }
 0x764   :  { %v2443_v34 = vsel %vm450_vm1, %v7704_v3, 0.0 }
 0x765   :  { %2444 = vadd.xlane.f32.xlu1 %v2443_v34 }
 0x767   :  { %v8548_v14 = vpop.eup %7705 }
 0x768   :  { %v2449_v40 = vsel %vm450_vm1, %v8548_v14, 0.0 }
 0x769   :  { %2450 = vadd.xlane.f32.xlu0 %v2449_v40 }
 0x76b   :  { %v8552_v41 = vpop.eup %7707 }
 0x76c   :  { %v2455_v43 = vsel %vm450_vm1, %v8552_v41, 0.0 }
 0x76d   :  { %2456 = vadd.xlane.f32.xlu1 %v2455_v43 }
 0x7a4   :  { %v8556_v27 = vpop.f32.mrb[28].mxu1 }
 0x7a5   :  { %v7221_v48 = vpop.f32.mrb[29].mxu1 }
 0x7a8   :  { %v8558_v0 = vpop.f32.mrb[30].mxu1 }
 0x7a9   :  { %v7231_v6 = vpop.f32.mrb[31].mxu1 }
 0x7ac   :  { %v8560_v17 = vpop.f32.mrb[32].mxu1 }
 0x7ad   :  { %v7241_v15 = vpop.f32.mrb[33].mxu1 }
 0x7e1   :  { %v8562_v61 = vpop.f32.mrb[34].mxu1 }
 0x7e2   :  { %v7251_v22 = vpop.f32.mrb[35].mxu1 }
 0x7e5   :  { %v3407_v10 = vpop.f32.mrb[36].mxu1 }
 0x7e6   :  { %v8565_v11 = vadd.f32 %v3407_v10, %v8211_v36  ;;  %v7284_v29 = vpop.f32.mrb[37].mxu1 }
 0x7e8   :  { %v3957_v2 = vsel %vm450_vm1, %v8565_v11, -inf }
 0x7e9   :  { %v3485_v50 = vpop.f32.mrb[38].mxu1  ;;  %3958 = vmax.xlane.f32.xlu0 %v3957_v2 }
 0x7ea   :  { %v8570_v32 = vadd.f32 %v3485_v50, %v8156_v16  ;;  %v7289_v34 = vpop.f32.mrb[39].mxu1 }
 0x7ec   :  { %v3960_v40 = vsel %vm450_vm1, %v8570_v32, -inf }
 0x7ed   :  { %v3563_v43 = vpop.f32.mrb[40].mxu1  ;;  %3961 = vmax.xlane.f32.xlu1 %v3960_v40 }
 0x7ee   :  { %v8575_v48 = vadd.f32 %v3563_v43, %v8204_v28  ;;  %v7294_v6 = vpop.f32.mrb[41].mxu1  ;;  %v2439_v15 = vpop.xlane.xlu0 %2438 }
 0x7ef   :  { %7709 = vrcp.f32 %v2439_v15 }
 0x7f0   :  { %v3963_v22 = vsel %vm450_vm1, %v8575_v48, -inf }
 0x7f1   :  { %v3641_v10 = vpop.f32.mrb[42].mxu1  ;;  %3964 = vmax.xlane.f32.xlu0 %v3963_v22 }
 0x7f2   :  { %v8580_v29 = vadd.f32 %v3641_v10, %v8159_v24  ;;  %v7299_v2 = vpop.f32.mrb[43].mxu1  ;;  %v2445_v50 = vpop.xlane.xlu1 %2444 }
 0x7f3   :  { %7711 = vrcp.f32 %v2445_v50 }
 0x7f4   :  { %v3966_v34 = vsel %vm450_vm1, %v8580_v29, -inf }
 0x7f5   :  { %v3719_v40 = vpop.f32.mrb[44].mxu1  ;;  %3967 = vmax.xlane.f32.xlu1 %v3966_v34 }
 0x7f6   :  { %v8585_v43 = vadd.f32 %v3719_v40, %v8213_v45  ;;  %v7304_v6 = vpop.f32.mrb[45].mxu1  ;;  %v2451_v15 = vpop.xlane.xlu0 %2450 }
 0x7f7   :  { %7713 = vrcp.f32 %v2451_v15 }
 0x7f8   :  { %v3969_v22 = vsel %vm450_vm1, %v8585_v43, -inf }
 0x7f9   :  { %v7710_v30 = vpop.eup %7709  ;;  %v3797_v10 = vpop.f32.mrb[46].mxu1  ;;  %3970 = vmax.xlane.f32.xlu0 %v3969_v22 }
 0x7fa   :  { %v2469_v2 = vmul.f32 %v7710_v30, %v7702_v4  ;;  %v8590_v50 = vadd.f32 %v3797_v10, %v8163_v33  ;;  %v7309_v24 = vpop.f32.mrb[47].mxu1  ;;  %v2457_v28 = vpop.xlane.xlu1 %2456  ;;  %v9014_v4 = vmov 0.0  }
 0x7fb   :  { %7715 = vrcp.f32 %v2457_v28 }
 0x7fc   :  { %7215 = vmatmul.mubr.msk.f32.vlgmr.msra.gmra.mrb[36].mxu0 %vm450_vm1, %v2469_v2  ;;  %v3972_v34 = vsel %vm450_vm1, %v8590_v50, -inf }
 0x7fd   :  { %v7712_v40 = vpop.eup %7711  ;;  %7223 = vmatpush3.msra.mxu0 %v8360_v51  ;;  %v3875_v6 = vpop.f32.mrb[48].mxu1  ;;  %3973 = vmax.xlane.f32.xlu1 %v3972_v34 }
 0x7fe   :  { %v2471_v15 = vmul.f32 %v7712_v40, %v7704_v3  ;;  %v8597_v22 = vadd.f32 %v3875_v6, %v8230_v53  ;;  %v7314_v30 = vpop.f32.mrb[49].mxu1  ;;  %7224 = vmatprep.mubr.msk.f32.mxu0 %vm7865_vm2, %v9014_v4  ;;  %7232 = vmatprep.subr.mxu0 %v9014_v4  ;;  %v7781_v40 = vld [vmem:[#allocation5] sm:$0xff]  ;;  %v7782_v6 = vld [vmem:[#allocation5 + $0x8] sm:$0xff] }
 0x800   :  { %7225 = vmatmul.mubr.msk.f32.vlgmr.msra.gmra.mrb[38].mxu0 %vm450_vm1, %v2471_v15  ;;  %v3975_v24 = vsel %vm450_vm1, %v8597_v22, -inf }
 0x801   :  { %v7714_v28 = vpop.eup %7713  ;;  %7233 = vmatpush3.msra.mxu0 %v8373_v62  ;;  %v3953_v51 = vpop.f32.mrb[50].mxu1  ;;  %3976 = vmax.xlane.f32.xlu0 %v3975_v24 }
 0x802   :  { %v2473_v3 = vmul.f32 %v7714_v28, %v8548_v14  ;;  %v3954_v10 = vadd.f32 %v3953_v51, %v8167_v47  ;;  %v7319_v2 = vpop.f32.mrb[51].mxu1  ;;  %7234 = vmatprep.mubr.msk.f32.mxu0 %vm7865_vm2, %v9014_v4  ;;  %7242 = vmatprep.subr.mxu0 %v9014_v4 }
 0x804   :  { %7235 = vmatmul.mubr.msk.f32.vlgmr.msra.gmra.mrb[40].mxu0 %vm450_vm1, %v2473_v3  ;;  %v3978_v34 = vsel %vm450_vm1, %v3954_v10, -inf }
 0x805   :  { %7243 = vmatpush3.msra.mxu0 %v8382_v63  ;;  %3979 = vmax.xlane.f32.xlu1 %v3978_v34  ;;  %v7716_v62 = vpop.eup %7715 }
 0x806   :  { %7244 = vmatprep.mubr.msk.f32.mxu0 %vm7865_vm2, %v9014_v4  ;;  %v2475_v14 = vmul.f32 %v7716_v62, %v8552_v41 }
 0x808   :  { %7245 = vmatmul.mubr.msk.f32.vlgmr.msra.gmra.mrb[42].mxu0 %vm450_vm1, %v2475_v14 }
 0x816   :  { %3201 = vrot.lane.b32.xlu1 %v7781_v40, %s7864_s12 }
 0x817   :  { %3069 = vrot.lane.b32.xlu0 %v7782_v6, %s7864_s12 }
 0x876   :  { %v3959_v15 = vpop.xlane.xlu0 %3958 }
 0x877   :  { %v3981_v30 = vsub.f32 %v8565_v11, %v3959_v15 }
 0x879   :  { %v3989_v24 = vmul.f32 1.442695, %v3981_v30 }
 0x87a   :  { %v3962_v63 = vpop.xlane.xlu1 %3961 }
 0x87b   :  { %7717 = vpow2.f32 %v3989_v24  ;;  %v3982_v28 = vsub.f32 %v8570_v32, %v3962_v63 }
 0x87d   :  { %v3991_v51 = vmul.f32 1.442695, %v3982_v28 }
 0x87e   :  { %v3965_v3 = vpop.xlane.xlu0 %3964 }
 0x87f   :  { %7719 = vpow2.f32 %v3991_v51  ;;  %v3983_v41 = vsub.f32 %v8575_v48, %v3965_v3 }
 0x881   :  { %v3993_v2 = vmul.f32 1.442695, %v3983_v41 }
 0x882   :  { %v3968_v34 = vpop.xlane.xlu1 %3967 }
 0x883   :  { %7721 = vpow2.f32 %v3993_v2  ;;  %v3984_v62 = vsub.f32 %v8580_v29, %v3968_v34 }
 0x885   :  { %v8624_v14 = vpop.eup %7717  ;;  %v3995_v40 = vmul.f32 1.442695, %v3984_v62 }
 0x886   :  { %v3971_v6 = vpop.xlane.xlu0 %3970  ;;  %v4005_v11 = vsel %vm450_vm1, %v8624_v14, 0.0 }
 0x887   :  { %7723 = vpow2.f32 %v3995_v40  ;;  %v3985_v32 = vsub.f32 %v8585_v43, %v3971_v6  ;;  %4006 = vadd.xlane.f32.xlu1 %v4005_v11 }
 0x889   :  { %v8629_v15 = vpop.eup %7719  ;;  %v3997_v30 = vmul.f32 1.442695, %v3985_v32 }
 0x88a   :  { %v3974_v48 = vpop.xlane.xlu1 %3973  ;;  %v4008_v24 = vsel %vm450_vm1, %v8629_v15, 0.0 }
 0x88b   :  { %7725 = vpow2.f32 %v3997_v30  ;;  %v3986_v29 = vsub.f32 %v8590_v50, %v3974_v48  ;;  %4009 = vadd.xlane.f32.xlu1 %v4008_v24 }
 0x88d   :  { %v8634_v63 = vpop.eup %7721  ;;  %v3999_v28 = vmul.f32 1.442695, %v3986_v29 }
 0x88e   :  { %v3977_v51 = vpop.xlane.xlu0 %3976  ;;  %v4011_v3 = vsel %vm450_vm1, %v8634_v63, 0.0 }
 0x88f   :  { %7727 = vpow2.f32 %v3999_v28  ;;  %v3987_v43 = vsub.f32 %v8597_v22, %v3977_v51  ;;  %4012 = vadd.xlane.f32.xlu1 %v4011_v3  ;;  %v7783_v51 = vld [vmem:[#allocation5 + $0x10] sm:$0xff] }
 0x891   :  { %v8639_v41 = vpop.eup %7723  ;;  %v4001_v2 = vmul.f32 1.442695, %v3987_v43 }
 0x892   :  { %v3980_v34 = vpop.xlane.xlu1 %3979  ;;  %v4014_v62 = vsel %vm450_vm1, %v8639_v41, 0.0  ;;  %v3070_v50 = vpop.permute.xlu0 %3069 }
 0x893   :  { %7729 = vpow2.f32 %v4001_v2  ;;  %v3988_v40 = vsub.f32 %v3954_v10, %v3980_v34  ;;  %4015 = vadd.xlane.f32.xlu1 %v4014_v62  ;;  %7252 = vmatprep.subr.mxu0 %v3070_v50 }
 0x894   :  { %7253 = vmatpush3.msra.mxu0 %v3070_v50 }
 0x895   :  { %v8643_v6 = vpop.eup %7725  ;;  %v4003_v11 = vmul.f32 1.442695, %v3988_v40 }
 0x896   :  { %v4017_v22 = vsel %vm450_vm1, %v8643_v6, 0.0  ;;  %v3202_v32 = vpop.permute.xlu1 %3201 }
 0x897   :  { %7731 = vpow2.f32 %v4003_v11  ;;  %4018 = vadd.xlane.f32.xlu1 %v4017_v22  ;;  %7266 = vmatprep.subr.mxu0 %v3202_v32 }
 0x899   :  { %v8647_v30 = vpop.eup %7727 }
 0x89a   :  { %v4020_v48 = vsel %vm450_vm1, %v8647_v30, 0.0 }
 0x89b   :  { %4021 = vadd.xlane.f32.xlu0 %v4020_v48 }
 0x89d   :  { %v8651_v10 = vpop.eup %7729 }
 0x89e   :  { %v4023_v24 = vsel %vm450_vm1, %v8651_v10, 0.0 }
 0x89f   :  { %4024 = vadd.xlane.f32.xlu1 %v4023_v24 }
 0x8a1   :  { %v8655_v29 = vpop.eup %7731 }
 0x8a2   :  { %v4026_v28 = vsel %vm450_vm1, %v8655_v29, 0.0 }
 0x8a3   :  { %4027 = vadd.xlane.f32.xlu0 %v4026_v28 }
 0x8b0   :  { %4777 = vrot.lane.b32.xlu1 %v8091_v1, %s7871_s18 }
 0x8b4   :  { %4637 = vrot.lane.b32.xlu1 %v7783_v51, %s7864_s12 }
 0x8b8   :  { %5011 = vrot.lane.b32.xlu1 %v8040_v26, %s7871_s18 }
 0x8b9   :  { %4779 = vrot.lane.b32.xlu0 %v7996_v37, %s7872_s19 }
 0x8bc   :  { %5169 = vrot.lane.b32.xlu1 %v8074_v57, %s7872_s19 }
 0x8bd   :  { %4857 = vrot.lane.b32.xlu0 %v7993_v35, %s7872_s19 }
 0x8c0   :  { %5167 = vrot.lane.b32.xlu1 %v8038_v25, %s7871_s18 }
 0x8c1   :  { %4855 = vrot.lane.b32.xlu0 %v8034_v19, %s7871_s18 }
 0x8c4   :  { %5325 = vrot.lane.b32.xlu1 %v8084_v60, %s7872_s19 }
 0x8c5   :  { %4935 = vrot.lane.b32.xlu0 %v8123_v21, %s7872_s19 }
 0x8c8   :  { %5323 = vrot.lane.b32.xlu1 %v8047_v31, %s7871_s18 }
 0x8c9   :  { %4933 = vrot.lane.b32.xlu0 %v8100_v7, %s7871_s18 }
 0x8cd   :  { %5013 = vrot.lane.b32.xlu0 %v8064_v55, %s7872_s19 }
 0x8cf   :  { %v2547_v37 = vpop.f32.mrb[36].mxu0 }
 0x8d0   :  { %v7216_v35 = vpop.f32.mrb[37].mxu0  ;;  %7254 = vmatprep.mubr.msk.f32.mxu0 %vm450_vm1, %v2547_v37 }
 0x8d1   :  { %5091 = vrot.lane.b32.xlu0 %v8133_v9, %s7872_s19  ;;  %7255 = vmatmul.mubr.msk.f32.vlgmr.msra.gmra.mrb[44].mxu0 %vm450_vm1, %v8556_v27 }
 0x8d2   :  { %7267 = vmatpush3.msra.mxu0 %v3202_v32 }
 0x8d3   :  { %v2695_v19 = vpop.f32.mrb[38].mxu0  ;;  %7320 = vmatprep.subr.mxu0 %v9014_v4 }
 0x8d4   :  { %v7226_v25 = vpop.f32.mrb[39].mxu0  ;;  %7257 = vmatprep.mubr.msk.f32.mxu0 %vm450_vm1, %v2695_v19 }
 0x8d5   :  { %5089 = vrot.lane.b32.xlu0 %v8102_v8, %s7871_s18  ;;  %7258 = vmatmul.mubr.msk.f32.gmra.mrb[46].mxu0 %vm450_vm1, %v8558_v0 }
 0x8d7   :  { %v2843_v26 = vpop.f32.mrb[40].mxu0 }
 0x8d8   :  { %v7236_v31 = vpop.f32.mrb[41].mxu0  ;;  %7260 = vmatprep.mubr.msk.f32.mxu0 %vm450_vm1, %v2843_v26 }
 0x8d9   :  { %5247 = vrot.lane.b32.xlu0 %v8143_v12, %s7872_s19  ;;  %7261 = vmatmul.mubr.msk.f32.gmra.mrb[48].mxu0 %vm450_vm1, %v8560_v17 }
 0x8db   :  { %v2991_v55 = vpop.f32.mrb[42].mxu0 }
 0x8dc   :  { %v7246_v57 = vpop.f32.mrb[43].mxu0  ;;  %7263 = vmatprep.mubr.msk.f32.mxu0 %vm450_vm1, %v2991_v55 }
 0x8dd   :  { %5245 = vrot.lane.b32.xlu0 %v8109_v20, %s7871_s18  ;;  %7264 = vmatmul.mubr.msk.f32.gmra.mrb[50].mxu0 %vm450_vm1, %v8562_v61 }
 0x8de   :  { %7268 = vmatprep.mubr.msk.f32.mxu0 %vm450_vm1, %v8425_v39 }
 0x8e1   :  { %7269 = vmatmul.mubr.msk.f32.vlgmr.msra.gmra.mrb[44].mxu0 %vm450_vm1, %v8309_v49 }
 0x8e2   :  { %7321 = vmatpush3.msra.mxu0 %v8476_v42  ;;  %7271 = vmatprep.mubr.msk.f32.mxu0 %vm450_vm1, %v8428_v44 }
 0x8e3   :  { %7330 = vmatprep.subr.mxu0 %v9014_v4 }
 0x8e5   :  { %7272 = vmatmul.mubr.msk.f32.gmra.mrb[46].mxu0 %vm450_vm1, %v8313_v52 }
 0x8e6   :  { %7274 = vmatprep.mubr.msk.f32.mxu0 %vm450_vm1, %v8431_v59 }
 0x8e9   :  { %7275 = vmatmul.mubr.msk.f32.gmra.mrb[48].mxu0 %vm450_vm1, %v8315_v54 }
 0x8ea   :  { %7277 = vmatprep.mubr.msk.f32.mxu0 %vm450_vm1, %v8436_v38 }
 0x8ed   :  { %7278 = vmatmul.mubr.msk.f32.gmra.mrb[50].mxu0 %vm450_vm1, %v8321_v58 }
 0x8ee   :  { %7322 = vmatprep.mubr.msk.f32.mxu0 %vm7865_vm2, %v9014_v4 }
 0x914   :  { %v4007_v60 = vpop.xlane.xlu1 %4006 }
 0x915   :  { %7733 = vrcp.f32 %v4007_v60 }
 0x918   :  { %v4010_v1 = vpop.xlane.xlu1 %4009 }
 0x919   :  { %7735 = vrcp.f32 %v4010_v1 }
 0x91c   :  { %v4013_v7 = vpop.xlane.xlu1 %4012 }
 0x91d   :  { %7737 = vrcp.f32 %v4013_v7 }
 0x91f   :  { %v7734_v8 = vpop.eup %7733 }
 0x920   :  { %v4037_v20 = vmul.f32 %v7734_v8, %v8624_v14  ;;  %v4016_v21 = vpop.xlane.xlu1 %4015 }
 0x921   :  { %7739 = vrcp.f32 %v4016_v21 }
 0x922   :  { %7323 = vmatmul.mubr.msk.f32.vlgmr.msra.gmra.mrb[52].mxu0 %vm450_vm1, %v4037_v20 }
 0x923   :  { %v7736_v9 = vpop.eup %7735  ;;  %7331 = vmatpush3.msra.mxu0 %v8479_v13  ;;  %7332 = vmatprep.mubr.msk.f32.mxu0 %vm7865_vm2, %v9014_v4 }
 0x924   :  { %v4038_v12 = vmul.f32 %v7736_v9, %v8629_v15  ;;  %v4019_v49 = vpop.xlane.xlu1 %4018  ;;  %7340 = vmatprep.subr.mxu0 %v9014_v4 }
 0x925   :  { %7741 = vrcp.f32 %v4019_v49  ;;  %v9015_v49 = vld [vmem:[#allocation12_spill] sm:$0xff] }
 0x926   :  { %7328 = vmatmul.mubr.msk.f32.vlgmr.msra.gmra.mrb[52].mxu1 %vm450_vm1, %v4038_v12 }
 0x927   :  { %v7738_v52 = vpop.eup %7737  ;;  %7336 = vmatpush3.msra.mxu1 %v8487_v5  ;;  %7337 = vmatprep.mubr.msk.f32.mxu1 %vm7865_vm2, %v9014_v4 }
 0x928   :  { %v4039_v54 = vmul.f32 %v7738_v52, %v8634_v63  ;;  %v4022_v58 = vpop.xlane.xlu0 %4021  ;;  %7345 = vmatprep.subr.mxu1 %v9014_v4 }
 0x929   :  { %7743 = vrcp.f32 %v4022_v58 }
 0x92a   :  { %7333 = vmatmul.mubr.msk.f32.vlgmr.msra.gmra.mrb[54].mxu0 %vm450_vm1, %v4039_v54 }
 0x92b   :  { %v7740_v39 = vpop.eup %7739  ;;  %7341 = vmatpush3.msra.mxu0 %v8499_v23  ;;  %7342 = vmatprep.mubr.msk.f32.mxu0 %vm7865_vm2, %v9014_v4 }
 0x92c   :  { %v4040_v44 = vmul.f32 %v7740_v39, %v8639_v41  ;;  %v4025_v59 = vpop.xlane.xlu1 %4024  ;;  %7350 = vmatprep.subr.mxu0 %v9014_v4  ;;  %v9016_v39 = vld [vmem:[#allocation11_spill] sm:$0xff] }
 0x92d   :  { %7745 = vrcp.f32 %v4025_v59 }
 0x92e   :  { %7338 = vmatmul.mubr.msk.f32.vlgmr.msra.gmra.mrb[54].mxu1 %vm450_vm1, %v4040_v44 }
 0x92f   :  { %v7742_v38 = vpop.eup %7741  ;;  %7346 = vmatpush3.msra.mxu1 %v8508_v18  ;;  %7347 = vmatprep.mubr.msk.f32.mxu1 %vm7865_vm2, %v9014_v4 }
 0x930   :  { %v4041_v42 = vmul.f32 %v7742_v38, %v8643_v6  ;;  %v4028_v13 = vpop.xlane.xlu0 %4027  ;;  %v4778_v5 = vpop.permute.xlu1 %4777  ;;  %7355 = vmatprep.subr.mxu1 %v9014_v4 }
 0x931   :  { %7747 = vrcp.f32 %v4028_v13 }
 0x932   :  { %7343 = vmatmul.mubr.msk.f32.vlgmr.msra.gmra.mrb[56].mxu0 %vm450_vm1, %v4041_v42 }
 0x933   :  { %v7744_v23 = vpop.eup %7743  ;;  %7351 = vmatpush3.msra.mxu0 %v8521_v46  ;;  %7352 = vmatprep.mubr.msk.f32.mxu0 %vm7865_vm2, %v9014_v4 }
 0x934   :  { %v4042_v18 = vmul.f32 %v7744_v23, %v8647_v30  ;;  %v8747_v27 = vpop.permute.xlu0 %4779  ;;  %v4638_v0 = vpop.permute.xlu1 %4637 }
 0x935   :  { %7360 = vmatprep.subr.mxu0 %v4638_v0 }
 0x936   :  { %7348 = vmatmul.mubr.msk.f32.vlgmr.msra.gmra.mrb[56].mxu1 %vm450_vm1, %v4042_v18 }
 0x937   :  { %v7746_v17 = vpop.eup %7745  ;;  %7356 = vmatpush3.msra.mxu1 %v8530_v56  ;;  %7357 = vmatprep.mubr.msk.f32.mxu1 %vm7865_vm2, %v9014_v4 }
 0x938   :  { %v4043_v61 = vmul.f32 %v7746_v17, %v8651_v10  ;;  %v4858_v46 = vpop.permute.xlu0 %4857  ;;  %7374 = vmatprep.subr.mxu1 %v9014_v4  ;;  %v5012_v3 = vpop.permute.xlu1 %5011 }
 0x93a   :  { %7353 = vmatmul.mubr.msk.f32.vlgmr.msra.gmra.mrb[58].mxu0 %vm450_vm1, %v4043_v61 }
 0x93b   :  { %v7748_v14 = vpop.eup %7747  ;;  %7361 = vmatpush3.msra.mxu0 %v4638_v0 }
 0x93c   :  { %v4044_v15 = vmul.f32 %v7748_v14, %v8655_v29  ;;  %v4856_v63 = vpop.permute.xlu0 %4855  ;;  %7394 = vmatprep.subr.mxu0 %v9014_v4  ;;  %v8767_v43 = vpop.permute.xlu1 %5169 }
 0x93e   :  { %7358 = vmatmul.mubr.msk.f32.vlgmr.msra.gmra.mrb[58].mxu1 %vm450_vm1, %v4044_v15 }
 0x93f   :  { %7375 = vmatpush3.xpose.msk.msra.mxu1 %vm450_vm1, %v8747_v27  ;;  %7376 = vmatprep.mubr.msk.f32.mxu1 %vm7865_vm2, %v9014_v4 }
 0x940   :  { %v8763_v56 = vpop.permute.xlu0 %4935  ;;  %7379 = vmatprep.subr.mxu1 %v9014_v4  ;;  %v5168_v34 = vpop.permute.xlu1 %5167 }
 0x942   :  { %7377 = vmatmul.mubr.msk.f32.vlgmr.msra.gmra.mrb[60].mxu1 %vm450_vm1, %v4778_v5 }
 0x943   :  { %7380 = vmatpush3.xpose.msk.msra.mxu1 %vm450_vm1, %v4858_v46  ;;  %7381 = vmatprep.mubr.msk.f32.mxu1 %vm7865_vm2, %v9014_v4 }
 0x944   :  { %v4934_v41 = vpop.permute.xlu0 %4933  ;;  %7384 = vmatprep.subr.mxu1 %v9014_v4  ;;  %v8788_v62 = vpop.permute.xlu1 %5325 }
 0x946   :  { %7382 = vmatmul.mubr.msk.f32.vlgmr.msra.gmra.mrb[62].mxu1 %vm450_vm1, %v4856_v63 }
 0x947   :  { %7385 = vmatpush3.xpose.msk.msra.mxu1 %vm450_vm1, %v8763_v56  ;;  %7386 = vmatprep.mubr.msk.f32.mxu1 %vm7865_vm2, %v9014_v4 }
 0x948   :  { %v8778_v2 = vpop.permute.xlu0 %5013  ;;  %7389 = vmatprep.subr.mxu1 %v9014_v4  ;;  %v5324_v50 = vpop.permute.xlu1 %5323 }
 0x94a   :  { %7387 = vmatmul.mubr.msk.f32.vlgmr.msra.gmra.mrb[64].mxu1 %vm450_vm1, %v4934_v41 }
 0x94b   :  { %7390 = vmatpush3.xpose.msk.msra.mxu1 %vm450_vm1, %v8778_v2  ;;  %7391 = vmatprep.mubr.msk.f32.mxu1 %vm7865_vm2, %v9014_v4 }
 0x94c   :  { %7399 = vmatprep.subr.mxu1 %v9014_v4  ;;  %v8806_v22 = vpop.permute.xlu0 %5091 }
 0x94e   :  { %7392 = vmatmul.mubr.msk.f32.vlgmr.msra.gmra.mrb[66].mxu1 %vm450_vm1, %v5012_v3 }
 0x94f   :  { %7400 = vmatpush3.xpose.msk.msra.mxu1 %vm450_vm1, %v8767_v43  ;;  %7401 = vmatprep.mubr.msk.f32.mxu1 %vm7865_vm2, %v9014_v4 }
 0x950   :  { %7409 = vmatprep.subr.mxu1 %v9014_v4  ;;  %v5090_v35 = vpop.permute.xlu0 %5089 }
 0x952   :  { %7402 = vmatmul.mubr.msk.f32.vlgmr.msra.gmra.mrb[68].mxu1 %vm450_vm1, %v5168_v34 }
 0x953   :  { %7410 = vmatpush3.xpose.msk.msra.mxu1 %vm450_vm1, %v8788_v62  ;;  %7411 = vmatprep.mubr.msk.f32.mxu1 %vm7865_vm2, %v9014_v4 }
 0x954   :  { %7419 = vmatprep.subr.mxu1 %v9014_v4  ;;  %v8818_v55 = vpop.permute.xlu0 %5247 }
 0x956   :  { %7412 = vmatmul.mubr.msk.f32.vlgmr.msra.gmra.mrb[70].mxu1 %vm450_vm1, %v5324_v50 }
 0x957   :  { %7420 = vmatpush3.msra.mxu1 %v4858_v46  ;;  %7421 = vmatprep.mubr.msk.f32.mxu1 %vm7865_vm2, %v9014_v4 }
 0x958   :  { %7429 = vmatprep.subr.mxu1 %v9014_v4  ;;  %v5246_v8 = vpop.permute.xlu0 %5245 }
 0x9f5   :  { %v4115_v40 = vpop.f32.mrb[52].mxu0 }
 0x9f6   :  { %v7324_v6 = vpop.f32.mrb[53].mxu0  ;;  %7362 = vmatprep.mubr.msk.f32.mxu0 %vm450_vm1, %v4115_v40 }
 0x9f9   :  { %v4189_v11 = vpop.f32.mrb[52].mxu1 }
 0x9fa   :  { %v7329_v32 = vpop.f32.mrb[53].mxu1  ;;  %7363 = vmatmul.mubr.msk.f32.vlgmr.msra.gmra.mrb[44].mxu0 %vm450_vm1, %v4189_v11 }
 0x9fb   :  { %7395 = vmatpush3.xpose.msk.msra.mxu0 %vm450_vm1, %v8806_v22 }
 0x9fc   :  { %7404 = vmatprep.subr.mxu0 %v9014_v4 }
 0x9fd   :  { %v4263_v30 = vpop.f32.mrb[54].mxu0 }
 0x9fe   :  { %v7334_v48 = vpop.f32.mrb[55].mxu0  ;;  %7365 = vmatprep.mubr.msk.f32.mxu0 %vm450_vm1, %v4263_v30 }
 0xa01   :  { %v4337_v10 = vpop.f32.mrb[54].mxu1 }
 0xa02   :  { %v7339_v24 = vpop.f32.mrb[55].mxu1  ;;  %7366 = vmatmul.mubr.msk.f32.gmra.mrb[46].mxu0 %vm450_vm1, %v4337_v10 }
 0xa05   :  { %v4411_v29 = vpop.f32.mrb[56].mxu0 }
 0xa06   :  { %v7344_v28 = vpop.f32.mrb[57].mxu0  ;;  %7368 = vmatprep.mubr.msk.f32.mxu0 %vm450_vm1, %v4411_v29 }
 0xa09   :  { %v4485_v51 = vpop.f32.mrb[56].mxu1 }
 0xa0a   :  { %v7349_v37 = vpop.f32.mrb[57].mxu1  ;;  %7369 = vmatmul.mubr.msk.f32.gmra.mrb[48].mxu0 %vm450_vm1, %v4485_v51 }
 0xa0d   :  { %v4559_v19 = vpop.f32.mrb[58].mxu0 }
 0xa0e   :  { %v7354_v25 = vpop.f32.mrb[59].mxu0  ;;  %7371 = vmatprep.mubr.msk.f32.mxu0 %vm450_vm1, %v4559_v19 }
 0xa11   :  { %v4633_v26 = vpop.f32.mrb[58].mxu1 }
 0xa12   :  { %v7359_v31 = vpop.f32.mrb[59].mxu1  ;;  %7372 = vmatmul.mubr.msk.f32.gmra.mrb[50].mxu0 %vm450_vm1, %v4633_v26 }
 0xa13   :  { %7396 = vmatprep.mubr.msk.f32.mxu0 %vm7865_vm2, %v9014_v4 }
 0xa15   :  { %v4851_v57 = vpop.f32.mrb[60].mxu1 }
 0xa16   :  { %v8823_v60 = vadd.f32 %v4851_v57, %v8211_v36  ;;  %v7378_v1 = vpop.f32.mrb[61].mxu1  ;;  %7397 = vmatmul.mubr.msk.f32.vlgmr.msra.gmra.mrb[60].mxu0 %vm450_vm1, %v5090_v35  ;;  %v7784_v35 = vld [vmem:[%s9006_s2] ss:$0 sm:$0xff]  ;;  %s7874_s2 = smov [#allocation7]  }
 0xa17   :  { %7405 = vmatpush3.xpose.msk.msra.mxu0 %vm450_vm1, %v8818_v55  ;;  %7406 = vmatprep.mubr.msk.f32.mxu0 %vm7865_vm2, %v9014_v4  ;;  %s6634_s24 = sshll.u32 %s7874_s2, 4  ;;  %s6635_s24 = int_to_ptr.vmem [resolvable:$true] %s6634_s24 }
 0xa18   :  { %v5401_v7 = vsel %vm450_vm1, %v8823_v60, -inf  ;;  %7414 = vmatprep.subr.mxu0 %v9014_v4  ;;  %s7830_s25 = scalar_lea.vmem %s6635_s24, 256  ;;  %p7835_p3 = scmp.lt.s32.totalorder %s6635_s24, %s6635_s24 }
 0xa19   :  { %5402 = vmax.xlane.f32.xlu0 %v5401_v7  ;;  %v4929_v20 = vpop.f32.mrb[62].mxu1  ;;  %p7831_p2 = scmp.ne.s32.totalorder %s6635_s24, %s7830_s25  ;;  %p7836_p4 = scmp.lt.s32.totalorder %s7830_s25, %s7830_s25 }
 0xa1a   :  { %v4930_v36 = vadd.f32 %v4929_v20, %v8156_v16  ;;  %v7383_v21 = vpop.f32.mrb[63].mxu1  ;;  %7407 = vmatmul.mubr.msk.f32.vlgmr.msra.gmra.mrb[62].mxu0 %vm450_vm1, %v5246_v8 }
 0xa1b   :  { %7415 = vmatpush3.msra.mxu0 %v8747_v27  ;;  %7416 = vmatprep.mubr.msk.f32.mxu0 %vm7865_vm2, %v9014_v4  ;;  %p7837_p5 = por %p7836_p4, %p7835_p3 }
 0xa1c   :  { %v5404_v9 = vsel %vm450_vm1, %v4930_v36, -inf  ;;  %7424 = vmatprep.subr.mxu0 %v9014_v4 }
 0xa1d   :  { %5405 = vmax.xlane.f32.xlu1 %v5404_v9  ;;  %v5007_v12 = vpop.f32.mrb[64].mxu1  ;;  %p7838_p6 = pnand %p7837_p5, %p7831_p2 }
 0xa1e   :  { %v5008_v52 = vadd.f32 %v5007_v12, %v9015_v49  ;;  %v7388_v54 = vpop.f32.mrb[65].mxu1 }
 0xa20   :  { %v5407_v58 = vsel %vm450_vm1, %v5008_v52, -inf }
 0xa21   :  { %5408 = vmax.xlane.f32.xlu0 %v5407_v58  ;;  %v5085_v16 = vpop.f32.mrb[66].mxu1 }
 0xa22   :  { %v5086_v44 = vadd.f32 %v5085_v16, %v9016_v39  ;;  %v7393_v59 = vpop.f32.mrb[67].mxu1 }
 0xa24   :  { %v5410_v38 = vsel %vm450_vm1, %v5086_v44, -inf }
 0xa25   :  { %5411 = vmax.xlane.f32.xlu0 %v5410_v38  ;;  %v5241_v42 = vpop.f32.mrb[68].mxu1 }
 0xa26   :  { %v5242_v13 = vadd.f32 %v5241_v42, %v8163_v33  ;;  %v7403_v5 = vpop.f32.mrb[69].mxu1 }
 0xa28   :  { %v5416_v23 = vsel %vm450_vm1, %v5242_v13, -inf }
 0xa29   :  { %5417 = vmax.xlane.f32.xlu0 %v5416_v23  ;;  %v5397_v18 = vpop.f32.mrb[70].mxu1 }
 0xa2a   :  { %v5398_v27 = vadd.f32 %v5397_v18, %v8167_v47  ;;  %v7413_v0 = vpop.f32.mrb[71].mxu1 }
 0xa2c   :  { %v5422_v17 = vsel %vm450_vm1, %v5398_v27, -inf }
 0xa2d   :  { %5423 = vmax.xlane.f32.xlu0 %v5422_v17 }
 0xaa6   :  { %v5403_v61 = vpop.xlane.xlu0 %5402 }
 0xaa7   :  { %v5425_v37 = vsub.f32 %v8823_v60, %v5403_v61 }
 0xaa9   :  { %v5433_v19 = vmul.f32 1.442695, %v5425_v37 }
 0xaaa   :  { %v5406_v46 = vpop.xlane.xlu1 %5405 }
 0xaab   :  { %v5426_v14 = vsub.f32 %v4930_v36, %v5406_v46 }
 0xaad   :  { %v5435_v15 = vmul.f32 1.442695, %v5426_v14 }
 0xaae   :  { %v5409_v63 = vpop.xlane.xlu0 %5408 }
 0xaaf   :  { %7749 = vpow2.f32 %v5435_v15  ;;  %v5427_v25 = vsub.f32 %v5008_v52, %v5409_v63 }
 0xab1   :  { %v5437_v26 = vmul.f32 1.442695, %v5427_v25 }
 0xab2   :  { %v5412_v3 = vpop.xlane.xlu0 %5411 }
 0xab3   :  { %v5428_v41 = vsub.f32 %v5086_v44, %v5412_v3 }
 0xab5   :  { %v5439_v33 = vmul.f32 1.442695, %v5428_v41 }
 0xab6   :  { %v5418_v34 = vpop.xlane.xlu0 %5417 }
 0xab7   :  { %7751 = vpow2.f32 %v5439_v33  ;;  %v5430_v50 = vsub.f32 %v5242_v13, %v5418_v34  ;;  %v7785_v33 = vld [vmem:[#allocation5 + $0x18] sm:$0xff] }
 0xab9   :  { %v7750_v40 = vpop.eup %7749  ;;  %v5443_v6 = vmul.f32 1.442695, %v5430_v50 }
 0xaba   :  { %v5424_v11 = vpop.xlane.xlu0 %5423  ;;  %v5452_v47 = vsel %vm450_vm1, %v7750_v40, 0.0 }
 0xabb   :  { %7753 = vpow2.f32 %v5443_v6  ;;  %v5432_v32 = vsub.f32 %v5398_v27, %v5424_v11  ;;  %5453 = vadd.xlane.f32.xlu0 %v5452_v47 }
 0xabd   :  { %v5447_v30 = vmul.f32 1.442695, %v5432_v32 }
 0xabf   :  { %7755 = vpow2.f32 %v5447_v30 }
 0xac0   :  { %7757 = vpow2.f32 %v5433_v19 }
 0xac1   :  { %v7752_v48 = vpop.eup %7751  ;;  %7759 = vpow2.f32 %v5437_v26 }
 0xac2   :  { %v5458_v10 = vsel %vm450_vm1, %v7752_v48, 0.0 }
 0xac3   :  { %5459 = vadd.xlane.f32.xlu0 %v5458_v10 }
 0xac5   :  { %v7754_v24 = vpop.eup %7753 }
 0xac6   :  { %v5464_v29 = vsel %vm450_vm1, %v7754_v24, 0.0 }
 0xac7   :  { %5465 = vadd.xlane.f32.xlu0 %v5464_v29 }
 0xac9   :  { %v7756_v28 = vpop.eup %7755 }
 0xaca   :  { %v5470_v51 = vsel %vm450_vm1, %v7756_v28, 0.0  ;;  %v7758_v21 = vpop.eup %7757 }
 0xacb   :  { %5471 = vadd.xlane.f32.xlu0 %v5470_v51  ;;  %v5449_v9 = vsel %vm450_vm1, %v7758_v21, 0.0  ;;  %v7760_v12 = vpop.eup %7759 }
 0xacc   :  { %v5455_v49 = vsel %vm450_vm1, %v7760_v12, 0.0 }
 0xae1   :  { %6221 = vrot.lane.b32.xlu0 %v7784_v35, %s7864_s12  ;;  %v6232_v35 = vlaneseq }
 0xae3   :  { %v8900_v19 = vshrl.u32 %v6232_v35, 7  ;;  %v8905_v26 = vand.u32 127, %v6232_v35 }
 0xae5   :  { %v8903_v25 = vadd.s32 8, %v8900_v19  ;;  %vm6239_vm9 = vcmp.eq.s32.totalorder %v8905_v26, %v8900_v19 }
 0xae7   :  { %vm6240_vm10 = vcmp.eq.s32.totalorder %v8905_v26, %v8903_v25 }
 0xae8   :  { %vm8929_vm11 = vmpackc.low %vm6240_vm10, %vm6239_vm9 }
 0xae9   :  { %v5163_v31 = vpop.f32.mrb[60].mxu0 }
 0xaea   :  { %v5164_v57 = vadd.f32 %v5163_v31, %v8213_v45  ;;  %v7398_v1 = vpop.f32.mrb[61].mxu0  ;;  %v6251_v31 = vadd.s32 32, %v8900_v19 }
 0xaeb   :  { %v8912_v1 = vadd.s32 16, %v8900_v19 }
 0xaec   :  { %v5413_v7 = vsel %vm450_vm1, %v5164_v57, -inf  ;;  %vm6255_vm3 = vcmp.eq.s32.totalorder %v8905_v26, %v6251_v31 }
 0xaed   :  { %5414 = vmax.xlane.f32.xlu1 %v5413_v7  ;;  %v5319_v8 = vpop.f32.mrb[62].mxu0  ;;  %v8915_v7 = vadd.s32 24, %v8900_v19  ;;  %vm6241_vm12 = vcmp.eq.s32.totalorder %v8905_v26, %v8912_v1 }
 0xaee   :  { %v5320_v60 = vadd.f32 %v5319_v8, %v8230_v53  ;;  %v7408_v20 = vpop.f32.mrb[63].mxu0  ;;  %v7873_v8 = vmov 1.0|1.0  }
 0xaef   :  { %v6254_v20 = vadd.s32 32, %v8915_v7  ;;  %vm6242_vm13 = vcmp.eq.s32.totalorder %v8905_v26, %v8915_v7 }
 0xaf0   :  { %v5419_v36 = vsel %vm450_vm1, %v5320_v60, -inf  ;;  %vm7540_vm14 = vmpackc.low %vm6242_vm13, %vm6241_vm12 }
 0xaf1   :  { %5420 = vmax.xlane.f32.xlu1 %v5419_v36  ;;  %vm6258_vm7 = vcmp.eq.s32.totalorder %v8905_v26, %v6254_v20 }
 0xaf5   :  { %5450 = vadd.xlane.f32.xlu1 %v5449_v9 }
 0xaf9   :  { %5456 = vadd.xlane.f32.xlu1 %v5455_v49 }
 0xb48   :  { %v5454_v45 = vpop.xlane.xlu0 %5453 }
 0xb49   :  { %7761 = vrcp.f32 %v5454_v45 }
 0xb50   :  { %v5460_v52 = vpop.xlane.xlu0 %5459 }
 0xb51   :  { %7763 = vrcp.f32 %v5460_v52 }
 0xb53   :  { %v7762_v54 = vpop.eup %7761 }
 0xb54   :  { %v5482_v58 = vmul.f32 %v7762_v54, %v7750_v40  ;;  %v5466_v16 = vpop.xlane.xlu0 %5465 }
 0xb55   :  { %7765 = vrcp.f32 %v5466_v16 }
 0xb56   :  { %7422 = vmatmul.mubr.msk.f32.vlgmr.msra.gmra.mrb[72].mxu1 %vm450_vm1, %v5482_v58 }
 0xb57   :  { %7430 = vmatpush3.msra.mxu1 %v8778_v2  ;;  %7431 = vmatprep.mubr.msk.f32.mxu1 %vm7865_vm2, %v9014_v4 }
 0xb58   :  { %v5472_v53 = vpop.xlane.xlu0 %5471  ;;  %7439 = vmatprep.subr.mxu1 %v9014_v4 }
 0xb59   :  { %7767 = vrcp.f32 %v5472_v53  ;;  %v6429_v53 = vadd.s32 64, %v8900_v19 }
 0xb5b   :  { %v7764_v39 = vpop.eup %7763  ;;  %vm6433_vm15 = vcmp.eq.s32.totalorder %v8905_v26, %v6429_v53 }
 0xb5c   :  { %v5484_v44 = vmul.f32 %v7764_v39, %v7752_v48  ;;  %v6222_v58 = vpop.permute.xlu0 %6221  ;;  %v6430_v39 = vadd.s32 64, %v8903_v25 }
 0xb5e   :  { %7432 = vmatmul.mubr.msk.f32.vlgmr.msra.gmra.mrb[74].mxu1 %vm450_vm1, %v5484_v44 }
 0xb5f   :  { %v7766_v59 = vpop.eup %7765  ;;  %7440 = vmatpush3.msra.mxu1 %v8767_v43  ;;  %7441 = vmatprep.mubr.msk.f32.mxu1 %vm7865_vm2, %v9014_v4 }
 0xb60   :  { %v5486_v38 = vmul.f32 %v7766_v59, %v7754_v24  ;;  %7449 = vmatprep.subr.mxu1 %v9014_v4 }
 0xb62   :  { %7442 = vmatmul.mubr.msk.f32.vlgmr.msra.gmra.mrb[76].mxu1 %vm450_vm1, %v5486_v38 }
 0xb63   :  { %v7768_v2 = vpop.eup %7767  ;;  %7450 = vmatpush3.msra.mxu1 %v8788_v62  ;;  %7451 = vmatprep.mubr.msk.f32.mxu1 %vm7865_vm2, %v9014_v4 }
 0xb64   :  { %v5488_v42 = vmul.f32 %v7768_v2, %v7756_v28 }
 0xb66   :  { %7452 = vmatmul.mubr.msk.f32.vlgmr.msra.gmra.mrb[78].mxu1 %vm450_vm1, %v5488_v42  ;;  %v6431_v42 = vadd.s32 64, %v8912_v1 }
 0xb7a   :  { %v5415_v13 = vpop.xlane.xlu1 %5414 }
 0xb7b   :  { %v5429_v5 = vsub.f32 %v5164_v57, %v5415_v13  ;;  %v6252_v57 = vadd.s32 32, %v8903_v25  ;;  %v6432_v13 = vadd.s32 64, %v8915_v7 }
 0xb7d   :  { %v5441_v43 = vmul.f32 1.442695, %v5429_v5  ;;  %vm6256_vm4 = vcmp.eq.s32.totalorder %v8905_v26, %v6252_v57  ;;  %v6528_v5 = vadd.s32 96, %v8900_v19 }
 0xb7e   :  { %v5421_v23 = vpop.xlane.xlu1 %5420  ;;  %vm7528_vm5 = vmpackc.low %vm6256_vm4, %vm6255_vm3  ;;  %vm6435_vm3 = vcmp.eq.s32.totalorder %v8905_v26, %v6431_v42  ;;  %vm6436_vm4 = vcmp.eq.s32.totalorder %v8905_v26, %v6432_v13 }
 0xb7f   :  { %7769 = vpow2.f32 %v5441_v43  ;;  %v5431_v18 = vsub.f32 %v5320_v60, %v5421_v23  ;;  %7529 = vmatprep.subr.msk.bf16.mxu1 %vm7528_vm5, %v7873_v8  ;;  %v6253_v60 = vadd.s32 32, %v8912_v1  ;;  %v6529_v43 = vadd.s32 96, %v8903_v25 }
 0xb80   :  { %7531 = vmatpush3.bf16.msk.msra.mxu1 %vm7528_vm5, %v7873_v8  ;;  %vm7548_vm5 = vmpackc.low %vm6436_vm4, %vm6435_vm3 }
 0xb81   :  { %v5445_v27 = vmul.f32 1.442695, %v5431_v18  ;;  %vm6257_vm6 = vcmp.eq.s32.totalorder %v8905_v26, %v6253_v60  ;;  %v6530_v18 = vadd.s32 96, %v8912_v1 }
 0xb82   :  { %v5451_v0 = vpop.xlane.xlu1 %5450  ;;  %vm7532_vm8 = vmpackc.low %vm6258_vm7, %vm6257_vm6  ;;  %vm6532_vm6 = vcmp.eq.s32.totalorder %v8905_v26, %v6528_v5  ;;  %vm6533_vm7 = vcmp.eq.s32.totalorder %v8905_v26, %v6529_v43 }
 0xb83   :  { %7771 = vpow2.f32 %v5445_v27  ;;  %7533 = vmatprep.subr.msk.bf16.mxu1 %vm7532_vm8, %v7873_v8  ;;  %v6531_v27 = vadd.s32 96, %v8915_v7  ;;  %vm6534_vm9 = vcmp.eq.s32.totalorder %v8905_v26, %v6530_v18 }
 0xb84   :  { %7773 = vrcp.f32 %v5451_v0  ;;  %7535 = vmatpush3.bf16.msk.msra.mxu1 %vm7532_vm8, %v7873_v8  ;;  %vm8969_vm8 = vmpackc.low %vm6533_vm7, %vm6532_vm6 }
 0xb85   :  { %7537 = vmatprep.subr.msk.bf16.mxu1 %vm8929_vm11, %v7873_v8  ;;  %vm6535_vm10 = vcmp.eq.s32.totalorder %v8905_v26, %v6531_v27 }
 0xb86   :  { %v5457_v17 = vpop.xlane.xlu1 %5456 }
 0xb87   :  { %7775 = vrcp.f32 %v5457_v17 }
 0xb89   :  { %v7770_v61 = vpop.eup %7769 }
 0xb8a   :  { %v5461_v62 = vsel %vm450_vm1, %v7770_v61, 0.0 }
 0xb8b   :  { %5462 = vadd.xlane.f32.xlu1 %v5461_v62 }
 0xb8d   :  { %v7772_v46 = vpop.eup %7771 }
 0xb8e   :  { %v7774_v14 = vpop.eup %7773  ;;  %v5467_v15 = vsel %vm450_vm1, %v7772_v46, 0.0 }
 0xb8f   :  { %v5481_v63 = vmul.f32 %v7774_v14, %v7758_v21  ;;  %5468 = vadd.xlane.f32.xlu1 %v5467_v15 }
 0xb91   :  { %v7776_v3 = vpop.eup %7775  ;;  %7417 = vmatmul.mubr.msk.f32.vlgmr.msra.gmra.mrb[64].mxu0 %vm450_vm1, %v5481_v63 }
 0xb92   :  { %v5483_v41 = vmul.f32 %v7776_v3, %v7760_v12  ;;  %7425 = vmatpush3.msra.mxu0 %v8763_v56  ;;  %7426 = vmatprep.mubr.msk.f32.mxu0 %vm7865_vm2, %v9014_v4 }
 0xb93   :  { %7434 = vmatprep.subr.mxu0 %v9014_v4 }
 0xb95   :  { %7427 = vmatmul.mubr.msk.f32.vlgmr.msra.gmra.mrb[66].mxu0 %vm450_vm1, %v5483_v41 }
 0xb96   :  { %7435 = vmatpush3.msra.mxu0 %v8806_v22  ;;  %7436 = vmatprep.mubr.msk.f32.mxu0 %vm7865_vm2, %v9014_v4 }
 0xb97   :  { %7444 = vmatprep.subr.mxu0 %v9014_v4 }
 0xba0   :  { %6081 = vrot.lane.b32.xlu1 %v7785_v33, %s7864_s12 }
 0xc18   :  { %v5463_v34 = vpop.xlane.xlu1 %5462 }
 0xc19   :  { %7777 = vrcp.f32 %v5463_v34 }
 0xc1c   :  { %v5469_v56 = vpop.xlane.xlu1 %5468 }
 0xc1d   :  { %7779 = vrcp.f32 %v5469_v56 }
 0xc20   :  { %v6082_v6 = vpop.permute.xlu1 %6081 }
 0xc23   :  { %v7778_v50 = vpop.eup %7777 }
 0xc24   :  { %v5485_v40 = vmul.f32 %v7778_v50, %v7770_v61 }
 0xc26   :  { %7437 = vmatmul.mubr.msk.f32.vlgmr.msra.gmra.mrb[68].mxu0 %vm450_vm1, %v5485_v40 }
 0xc27   :  { %v7780_v11 = vpop.eup %7779  ;;  %7445 = vmatpush3.msra.mxu0 %v8818_v55  ;;  %7446 = vmatprep.mubr.msk.f32.mxu0 %vm7865_vm2, %v9014_v4 }
 0xc28   :  { %v5487_v22 = vmul.f32 %v7780_v11, %v7772_v46  ;;  %7454 = vmatprep.subr.mxu0 %v6082_v6 }
 0xc29   :  { %v5633_v47 = vpop.f32.mrb[72].mxu1 }
 0xc2a   :  { %v7423_v32 = vpop.f32.mrb[73].mxu1  ;;  %7447 = vmatmul.mubr.msk.f32.vlgmr.msra.gmra.mrb[70].mxu0 %vm450_vm1, %v5487_v22 }
 0xc2b   :  { %7455 = vmatpush3.msra.mxu0 %v6082_v6 }
 0xc31   :  { %v5781_v30 = vpop.f32.mrb[74].mxu1 }
 0xc32   :  { %v7433_v48 = vpop.f32.mrb[75].mxu1 }
 0xc35   :  { %v5929_v10 = vpop.f32.mrb[76].mxu1 }
 0xc36   :  { %v7443_v24 = vpop.f32.mrb[77].mxu1 }
 0xc39   :  { %v6077_v29 = vpop.f32.mrb[78].mxu1 }
 0xc3a   :  { %v7453_v28 = vpop.f32.mrb[79].mxu1 }
 0xc64   :  { %v5559_v51 = vpop.f32.mrb[64].mxu0 }
 0xc65   :  { %v7418_v37 = vpop.f32.mrb[65].mxu0  ;;  %7456 = vmatprep.mubr.msk.f32.mxu0 %vm450_vm1, %v5559_v51 }
 0xc66   :  { %7457 = vmatmul.mubr.msk.f32.vlgmr.msra.gmra.mrb[44].mxu0 %vm450_vm1, %v5633_v47 }
 0xc68   :  { %v5707_v4 = vpop.f32.mrb[66].mxu0 }
 0xc69   :  { %v7428_v55 = vpop.f32.mrb[67].mxu0  ;;  %7459 = vmatprep.mubr.msk.f32.mxu0 %vm450_vm1, %v5707_v4 }
 0xc6a   :  { %7460 = vmatmul.mubr.msk.f32.gmra.mrb[46].mxu0 %vm450_vm1, %v5781_v30 }
 0xcf9   :  { %v5855_v21 = vpop.f32.mrb[68].mxu0 }
 0xcfa   :  { %v7438_v9 = vpop.f32.mrb[69].mxu0  ;;  %7462 = vmatprep.mubr.msk.f32.mxu0 %vm450_vm1, %v5855_v21 }
 0xcfb   :  { %7463 = vmatmul.mubr.msk.f32.gmra.mrb[48].mxu0 %vm450_vm1, %v5929_v10 }
 0xcfd   :  { %v6003_v12 = vpop.f32.mrb[70].mxu0 }
 0xcfe   :  { %v7448_v49 = vpop.f32.mrb[71].mxu0  ;;  %7465 = vmatprep.mubr.msk.f32.mxu0 %vm450_vm1, %v6003_v12 }
 0xcff   :  { %7466 = vmatmul.mubr.msk.f32.gmra.mrb[50].mxu0 %vm450_vm1, %v6077_v29  ;;  %vm6434_vm1 = vcmp.eq.s32.totalorder %v8905_v26, %v6430_v39 }
 0xd00   :  { %vm7544_vm2 = vmpackc.low %vm6434_vm1, %vm6433_vm15 }
 0xd39   :  { %v7458_v45 = vpop.f32.mrb[44].mxu0 }
 0xd3a   :  { %v6174_v52 = vpop.f32.mrb[45].mxu0  ;;  %v6225_v2 = vadd.f32 %v7458_v45, %v6222_v58 }
 0xd3b   :  { %v6224_v38 = vadd.f32 %v6222_v58, %v6174_v52 }
 0xd3d   :  { %v7461_v54 = vpop.f32.mrb[46].mxu0 }
 0xd3e   :  { %v6184_v16 = vpop.f32.mrb[47].mxu0  ;;  %v6227_v59 = vadd.f32 %v7461_v54, %v6222_v58 }
 0xd3f   :  { %v6226_v44 = vadd.f32 %v6222_v58, %v6184_v16 }
 0xd41   :  { %7476 = vmatprep.mubr.msk.f32.mxu1 %vm62_vm0, %v6226_v44 }
 0xd42   :  { %7477 = vmatmul.mubr.msk.f32.vlgmr.msra.gmra.mrb[80].mxu1 %vm62_vm0, %v6227_v59 }
 0xd43   :  { %7539 = vmatpush3.bf16.msk.msra.mxu1 %vm8929_vm11, %v7873_v8  ;;  %7487 = vmatprep.mubr.msk.f32.mxu1 %vm62_vm0, %v6224_v38  ;;  %vm7556_vm11 = vmpackc.low %vm6535_vm10, %vm6534_vm9 }
 0xd44   :  { %7541 = vmatprep.subr.msk.bf16.mxu1 %vm7540_vm14, %v7873_v8 }
 0xd47   :  { %7543 = vmatpush3.bf16.msk.msra.mxu1 %vm7540_vm14, %v7873_v8 }
 0xd48   :  { %7545 = vmatprep.subr.msk.bf16.mxu1 %vm7544_vm2, %v7873_v8 }
 0xd4a   :  { %7488 = vmatmul.mubr.msk.f32.vlgmr.msra.gmra.mrb[80].mxu1 %vm62_vm0, %v6225_v2 }
 0xd4b   :  { %7547 = vmatpush3.bf16.msk.msra.mxu1 %vm7544_vm2, %v7873_v8 }
 0xd4c   :  { %7549 = vmatprep.subr.msk.bf16.mxu1 %vm7548_vm5, %v7873_v8 }
 0xd4f   :  { %7551 = vmatpush3.bf16.msk.msra.mxu1 %vm7548_vm5, %v7873_v8 }
 0xd50   :  { %7553 = vmatprep.subr.msk.bf16.mxu1 %vm8969_vm8, %v7873_v8 }
 0xdce   :  { %v7464_v0 = vpop.f32.mrb[48].mxu0 }
 0xdcf   :  { %v6194_v17 = vpop.f32.mrb[49].mxu0  ;;  %v6229_v62 = vadd.f32 %v7464_v0, %v6222_v58 }
 0xdd0   :  { %v6228_v61 = vadd.f32 %v6222_v58, %v6194_v17 }
 0xdd2   :  { %v7467_v46 = vpop.f32.mrb[50].mxu0  ;;  %7498 = vmatprep.mubr.msk.f32.mxu1 %vm62_vm0, %v6228_v61 }
 0xdd3   :  { %v6204_v14 = vpop.f32.mrb[51].mxu0  ;;  %7499 = vmatmul.mubr.msk.f32.vlgmr.msra.gmra.mrb[80].mxu1 %vm62_vm0, %v6229_v62  ;;  %v6231_v63 = vadd.f32 %v7467_v46, %v6222_v58 }
 0xdd4   :  { %v6230_v15 = vadd.f32 %v6222_v58, %v6204_v14  ;;  %7555 = vmatpush3.bf16.msk.msra.mxu1 %vm8969_vm8, %v7873_v8 }
 0xdd5   :  { %7557 = vmatprep.subr.msk.bf16.mxu1 %vm7556_vm11, %v7873_v8 }
 0xdd6   :  { %7509 = vmatprep.mubr.msk.f32.mxu1 %vm62_vm0, %v6230_v15 }
 0xdd8   :  { %7559 = vmatpush3.bf16.msk.msra.mxu1 %vm7556_vm11, %v7873_v8 }
 0xddb   :  { %7510 = vmatmul.mubr.msk.f32.vlgmr.msra.gmra.mrb[80].mxu1 %vm62_vm0, %v6231_v63 }
 0xeae   :  { %v7511_v3 = vpop.f32.mrb[80].mxu1 }
 0xeaf   :  { %6628 = vst [vmem:[#allocation7 + $0x8] sm:$0xff] %v7511_v3  ;;  %v6616_v41 = vpop.f32.mrb[81].mxu1 }
 0xeb0   :  { %6627 = vst [vmem:[#allocation7] sm:$0xff] %v6616_v41 }
 0xeb1   :  { %7841 = shalt.err (!%p7838_p6)
}
 0xeb2   :  { %s7842_s28 = scalar_lea.hbm %s9007_s3, 256 }
 0xeb3   :  { %p7843_p7 = scmp.ne.s32.totalorder %s9007_s3, %s7842_s28  ;;  %p7846_p8 = scmp.lt.u32.totalorder %s7842_s28, %s9007_s3 }
 0xeb5   :  { %p7848_p9 = pnand %p7846_p8, %p7843_p7 }
 0xeb7   :  { %7851 = shalt.err (!%p7848_p9)
}
 0xeb8   :  { %6640 = dma.vmem_to_hbm [thread:$0]  %s6635_s24, 256, %s9007_s3, [#allocation4], %s7859_s22, %s7859_s22, %s7860_s23  }
 0xeb9   :  { %7856 = dma.done.wait [#allocation4], 256  }
 0xeba   :  { %7857 = vsyncadd [#allocation4], 4294967040 }
 0xebb   :  { %6644 = vsyncpa [#allocation3], 1 }
 0xebc   :  { %6645 = vsyncpa [#allocation6], 1 }
 0xebd   :  { %6646 = vsyncpa [#allocation4], 1 }

</bundles_post_ra>
